<compile_context>
chip_gen: v5e
topology: v5e:2x2
jax: 0.10.0
libtpu: 0.0.40
codegen_flags: <defaults>
</compile_context>

<pallas_src>
import functools

import jax
import jax.numpy as jnp
from jax.experimental import pallas as pl
from jax.experimental.pallas import tpu as pltpu

# ----------------------------- model sizes ---------------------------------
SENT_MAX = 16   # config.sentence_max_size
EMB_DIM  = 32   # config.word_embedding_dimension
HIDDEN   = 32   # GRU hidden size
CNN_CH   = 32   # number of conv filters
KH       = 3    # conv kernel height (over words), kernel width == EMB_DIM
N_CLASS  = 4
L_OUT    = SENT_MAX - KH + 1

_VMEM = functools.partial(pl.BlockSpec, memory_space=pltpu.MemorySpace.VMEM)


# --------------------------- fused CRAN kernel ------------------------------
def _cran_kernel(x_ref, w_conv_ref, wx_ref, wh_ref, w_qc_ref, wo_h_ref,
                 biases_ref, out_ref, rnn_sc):
    f32 = jnp.float32
    bf16 = jnp.bfloat16

    # ---- unpack biases (one bias per row of the packed (8, 96) slab) ----
    b_conv = biases_ref[0:1, 0:CNN_CH]                 # (1, 32)
    bx     = biases_ref[1:2, :]                        # (1, 96)
    bh     = biases_ref[2:3, :]                        # (1, 96)
    bq     = biases_ref[3:4, 0:HIDDEN]                 # (1, 32)
    bo     = biases_ref[4:5, 0:N_CLASS]                # (1, 4)

    # ---- zero-pad the sentence to SENT_MAX rows, in-kernel ----
    x = x_ref[...].astype(bf16)                        # (L_in, D)
    l_in = x_ref.shape[0]
    if l_in < SENT_MAX:
        x_pad = jnp.concatenate(
            [x, jnp.zeros((SENT_MAX - l_in, EMB_DIM), bf16)], axis=0)
    else:
        x_pad = x                                      # (16, 32) bf16

    # ---- CNN: Conv2d(1, C, (KH, D)) as sum of KH shifted matmuls ----
    y = jnp.zeros((L_OUT, CNN_CH), f32)
    for k in range(KH):
        y = y + jnp.dot(x_pad[k:k + L_OUT, :],
                        w_conv_ref[k * EMB_DIM:(k + 1) * EMB_DIM, :],
                        preferred_element_type=f32)
    y = jnp.maximum(y + b_conv, 0.0)                   # bias + ReLU
    cnn_out = jnp.max(y, axis=0, keepdims=True)        # max-over-time, (1, 32)

    # ---- GRU (gates packed [r | z | n] along the last axis) ----
    # Input-side gates hoisted out of the time loop: one (16,32)@(32,96).
    gx_all = jnp.dot(x_pad, wx_ref[...], preferred_element_type=f32) + bx  # (16, 96)
    wh_b = wh_ref[...]                                 # (32, 96) bf16

    h = jnp.zeros((1, HIDDEN), f32)
    for t in range(SENT_MAX):          # fully unrolled; h stays in vregs
        gx = gx_all[t:t + 1, :]                                          # (1, 96)
        gh = jnp.dot(h.astype(bf16), wh_b, preferred_element_type=f32) + bh
        r = jax.nn.sigmoid(gx[:, 0:HIDDEN] + gh[:, 0:HIDDEN])
        z = jax.nn.sigmoid(gx[:, HIDDEN:2 * HIDDEN] + gh[:, HIDDEN:2 * HIDDEN])
        n = jnp.tanh(gx[:, 2 * HIDDEN:] + r * gh[:, 2 * HIDDEN:])
        h = (1.0 - z) * n + z * h
        rnn_sc[t:t + 1, :] = h

    # ---- Attention: CNN feature as query over the GRU hidden states ----
    rnn = rnn_sc[...]                                                    # (16, 32)
    qc = jnp.dot(cnn_out.astype(bf16), w_qc_ref[...],
                 preferred_element_type=f32)                             # (1, 36)
    q = qc[:, 0:HIDDEN] + bq                                             # (1, 32)
    logits_c = qc[:, HIDDEN:HIDDEN + N_CLASS]                            # (1, 4)

    scores = jnp.sum(rnn * q, axis=1, keepdims=True)                     # (16, 1)
    m = jnp.max(scores, axis=0, keepdims=True)
    e = jnp.exp(scores - m)
    attn = e * pl.reciprocal(jnp.sum(e, axis=0, keepdims=True), approx=True)
    context = jnp.sum(attn * rnn, axis=0, keepdims=True)                 # (1, 32)

    logits = (jnp.dot(context.astype(bf16), wo_h_ref[...],
                      preferred_element_type=f32)
              + logits_c + bo)                                           # (1, 4)

    # final class softmax (== F.softmax on the 4-class vector), shape (1, 4)
    lm = jnp.max(logits, axis=1, keepdims=True)
    le = jnp.exp(logits - lm)
    out_ref[...] = le / jnp.sum(le, axis=1, keepdims=True)


# ------------------------------ CRAN forward -------------------------------
@jax.jit
def cran_forward(x, params):
    return pl.pallas_call(
        _cran_kernel,
        out_shape=jax.ShapeDtypeStruct((1, N_CLASS), jnp.float32),
        in_specs=[_VMEM()] * 7,
        out_specs=_VMEM(),
        scratch_shapes=[pltpu.VMEM((SENT_MAX, HIDDEN), jnp.float32)],
    )(x, params["w_conv"], params["wx"], params["wh"],
      params["w_qc"], params["wo_h"], params["biases"])


def init_params(key):
    """Parameters are pre-packed once here (gates -> (32,96), biases -> one slab)."""
    keys = jax.random.split(key, 11)
    s = 0.1
    w_conv = s * jax.random.normal(keys[0], (KH * EMB_DIM, CNN_CH), jnp.float32)
    b_conv = s * jax.random.normal(keys[1], (CNN_CH,), jnp.float32)
    # GRU, gates packed [r | z | n] along the last axis
    wx = s * jax.random.normal(keys[2], (EMB_DIM, 3 * HIDDEN), jnp.float32)
    wh = s * jax.random.normal(keys[3], (HIDDEN, 3 * HIDDEN), jnp.float32)
    bx = s * jax.random.normal(keys[4], (3 * HIDDEN,), jnp.float32)
    bh = s * jax.random.normal(keys[5], (3 * HIDDEN,), jnp.float32)
    # Attention: query projection + output head (split to avoid concat of h/cnn)
    wq   = s * jax.random.normal(keys[6], (CNN_CH, HIDDEN), jnp.float32)
    bq   = s * jax.random.normal(keys[7], (HIDDEN,), jnp.float32)
    wo_c = s * jax.random.normal(keys[8], (CNN_CH, N_CLASS), jnp.float32)
    wo_h = s * jax.random.normal(keys[9], (HIDDEN, N_CLASS), jnp.float32)
    bo   = s * jax.random.normal(keys[10], (N_CLASS,), jnp.float32)

    # all biases in one (8, 96) f32 slab, one bias per row
    biases = jnp.zeros((8, 3 * HIDDEN), jnp.float32)
    biases = biases.at[0, :CNN_CH].set(b_conv)
    biases = biases.at[1, :].set(bx)
    biases = biases.at[2, :].set(bh)
    biases = biases.at[3, :HIDDEN].set(bq)
    biases = biases.at[4, :N_CLASS].set(bo)

    return {
        "w_conv": w_conv.astype(jnp.bfloat16),                              # (96, 32)
        "wx": wx.astype(jnp.bfloat16),                                      # (32, 96)
        "wh": wh.astype(jnp.bfloat16),                                      # (32, 96)
        "w_qc": jnp.concatenate([wq, wo_c], axis=1).astype(jnp.bfloat16),   # (32, 36)
        "wo_h": wo_h.astype(jnp.bfloat16),                                  # (32, 4)
        "biases": biases,                                                   # (8, 96)
    }


if __name__ == "__main__":
    key = jax.random.PRNGKey(0)
    k_x, k_p = jax.random.split(key)
    # input sentence: 8 words, each a 32-dim embedding (padded to 16 in-kernel)
    x = jax.random.normal(k_x, (8, EMB_DIM), jnp.float32)
    params = init_params(k_p)

    out = cran_forward(x, params)
    out = jax.block_until_ready(out)

    assert out.shape == (1, N_CLASS)
    assert bool(jnp.isfinite(out).all())
    assert abs(float(jnp.sum(out)) - 1.0) < 1e-4   # softmax probabilities
    print("KERNEL_OK")
</pallas_src>

<mosaic_0001>
module attributes {stable_mosaic.version = 11 : i64} {
  func.func @_cran_kernel(%arg0: memref<8x32xf32, #tpu.memory_space<vmem>>, %arg1: memref<96x32xbf16, #tpu.memory_space<vmem>>, %arg2: memref<32x96xbf16, #tpu.memory_space<vmem>>, %arg3: memref<32x96xbf16, #tpu.memory_space<vmem>>, %arg4: memref<32x36xbf16, #tpu.memory_space<vmem>>, %arg5: memref<32x4xbf16, #tpu.memory_space<vmem>>, %arg6: memref<8x96xf32, #tpu.memory_space<vmem>>, %arg7: memref<1x4xf32, #tpu.memory_space<vmem>>, %arg8: memref<16x32xf32, #tpu.memory_space<vmem>>) attributes {dimension_semantics = [], scalar_prefetch = 0 : i64, scratch_operands = 1 : i64, tpu.core_type = #tpu.core_type<tc>} {
    %c0 = arith.constant 0 : index
    %c0_0 = arith.constant 0 : index
    %0 = vector.load %arg6[%c0, %c0_0] : memref<8x96xf32, #tpu.memory_space<vmem>>, vector<1x32xf32>
    %c1 = arith.constant 1 : index
    %c0_1 = arith.constant 0 : index
    %1 = vector.load %arg6[%c1, %c0_1] : memref<8x96xf32, #tpu.memory_space<vmem>>, vector<1x96xf32>
    %c2 = arith.constant 2 : index
    %c0_2 = arith.constant 0 : index
    %2 = vector.load %arg6[%c2, %c0_2] : memref<8x96xf32, #tpu.memory_space<vmem>>, vector<1x96xf32>
    %c3 = arith.constant 3 : index
    %c0_3 = arith.constant 0 : index
    %3 = vector.load %arg6[%c3, %c0_3] : memref<8x96xf32, #tpu.memory_space<vmem>>, vector<1x32xf32>
    %c4 = arith.constant 4 : index
    %c0_4 = arith.constant 0 : index
    %4 = vector.load %arg6[%c4, %c0_4] : memref<8x96xf32, #tpu.memory_space<vmem>>, vector<1x4xf32>
    %c0_5 = arith.constant 0 : index
    %c0_6 = arith.constant 0 : index
    %5 = vector.load %arg0[%c0_5, %c0_6] : memref<8x32xf32, #tpu.memory_space<vmem>>, vector<8x32xf32>
    %6 = arith.truncf %5 : vector<8x32xf32> to vector<8x32xbf16>
    %cst = arith.constant 0.000000e+00 : bf16
    %7 = vector.broadcast %cst : bf16 to vector<8x32xbf16>
    %8 = tpu.concatenate %6, %7 in 0 : vector<8x32xbf16>, vector<8x32xbf16> -> vector<16x32xbf16>
    %cst_7 = arith.constant 0.000000e+00 : f32
    %9 = vector.broadcast %cst_7 : f32 to vector<14x32xf32>
    %10 = vector.extract_strided_slice %8 {offsets = [0, 0], sizes = [14, 32], strides = [1, 1]} : vector<16x32xbf16> to vector<14x32xbf16>
    %c0_8 = arith.constant 0 : index
    %c0_9 = arith.constant 0 : index
    %11 = vector.load %arg1[%c0_8, %c0_9] : memref<96x32xbf16, #tpu.memory_space<vmem>>, vector<32x32xbf16>
    %cst_10 = arith.constant dense<0.000000e+00> : vector<14x32xf32>
    %12 = tpu.matmul %10, %11, %cst_10 {dimension_numbers = #tpu.dot_dimension_numbers<[1], [0], [0], [1], [0, 0, 1, 1], [], []>} : vector<14x32xbf16>, vector<32x32xbf16>, vector<14x32xf32> -> vector<14x32xf32>
    %13 = arith.addf %9, %12 : vector<14x32xf32>
    %14 = vector.extract_strided_slice %8 {offsets = [1, 0], sizes = [14, 32], strides = [1, 1]} : vector<16x32xbf16> to vector<14x32xbf16>
    %c32 = arith.constant 32 : index
    %c0_11 = arith.constant 0 : index
    %15 = vector.load %arg1[%c32, %c0_11] : memref<96x32xbf16, #tpu.memory_space<vmem>>, vector<32x32xbf16>
    %cst_12 = arith.constant dense<0.000000e+00> : vector<14x32xf32>
    %16 = tpu.matmul %14, %15, %cst_12 {dimension_numbers = #tpu.dot_dimension_numbers<[1], [0], [0], [1], [0, 0, 1, 1], [], []>} : vector<14x32xbf16>, vector<32x32xbf16>, vector<14x32xf32> -> vector<14x32xf32>
    %17 = arith.addf %13, %16 : vector<14x32xf32>
    %18 = vector.extract_strided_slice %8 {offsets = [2, 0], sizes = [14, 32], strides = [1, 1]} : vector<16x32xbf16> to vector<14x32xbf16>
    %c64 = arith.constant 64 : index
    %c0_13 = arith.constant 0 : index
    %19 = vector.load %arg1[%c64, %c0_13] : memref<96x32xbf16, #tpu.memory_space<vmem>>, vector<32x32xbf16>
    %cst_14 = arith.constant dense<0.000000e+00> : vector<14x32xf32>
    %20 = tpu.matmul %18, %19, %cst_14 {dimension_numbers = #tpu.dot_dimension_numbers<[1], [0], [0], [1], [0, 0, 1, 1], [], []>} : vector<14x32xbf16>, vector<32x32xbf16>, vector<14x32xf32> -> vector<14x32xf32>
    %21 = arith.addf %17, %20 : vector<14x32xf32>
    %22 = vector.broadcast %0 : vector<1x32xf32> to vector<14x32xf32>
    %23 = arith.addf %21, %22 : vector<14x32xf32>
    %cst_15 = arith.constant 0.000000e+00 : f32
    %24 = vector.broadcast %cst_15 : f32 to vector<14x32xf32>
    %25 = arith.maximumf %23, %24 : vector<14x32xf32>
    %cst_16 = arith.constant dense<0xFF800000> : vector<32xf32>
    %26 = vector.multi_reduction <maximumf>, %25, %cst_16 [0] : vector<14x32xf32> to vector<32xf32>
    %27 = vector.shape_cast %26 : vector<32xf32> to vector<1x32xf32>
    %c0_17 = arith.constant 0 : index
    %c0_18 = arith.constant 0 : index
    %28 = vector.load %arg2[%c0_17, %c0_18] : memref<32x96xbf16, #tpu.memory_space<vmem>>, vector<32x96xbf16>
    %cst_19 = arith.constant dense<0.000000e+00> : vector<16x96xf32>
    %29 = tpu.matmul %8, %28, %cst_19 {dimension_numbers = #tpu.dot_dimension_numbers<[1], [0], [0], [1], [0, 0, 1, 1], [], []>} : vector<16x32xbf16>, vector<32x96xbf16>, vector<16x96xf32> -> vector<16x96xf32>
    %30 = vector.broadcast %1 : vector<1x96xf32> to vector<16x96xf32>
    %31 = arith.addf %29, %30 : vector<16x96xf32>
    %c0_20 = arith.constant 0 : index
    %c0_21 = arith.constant 0 : index
    %32 = vector.load %arg3[%c0_20, %c0_21] : memref<32x96xbf16, #tpu.memory_space<vmem>>, vector<32x96xbf16>
    %cst_22 = arith.constant 0.000000e+00 : f32
    %33 = vector.broadcast %cst_22 : f32 to vector<1x32xf32>
    %34 = vector.extract_strided_slice %31 {offsets = [0, 0], sizes = [1, 96], strides = [1, 1]} : vector<16x96xf32> to vector<1x96xf32>
    %35 = arith.truncf %33 : vector<1x32xf32> to vector<1x32xbf16>
    %cst_23 = arith.constant dense<0.000000e+00> : vector<1x96xf32>
    %36 = tpu.matmul %35, %32, %cst_23 {dimension_numbers = #tpu.dot_dimension_numbers<[1], [0], [0], [1], [0, 0, 1, 1], [], []>} : vector<1x32xbf16>, vector<32x96xbf16>, vector<1x96xf32> -> vector<1x96xf32>
    %37 = arith.addf %36, %2 : vector<1x96xf32>
    %38 = vector.extract_strided_slice %34 {offsets = [0, 0], sizes = [1, 32], strides = [1, 1]} : vector<1x96xf32> to vector<1x32xf32>
    %39 = vector.extract_strided_slice %37 {offsets = [0, 0], sizes = [1, 32], strides = [1, 1]} : vector<1x96xf32> to vector<1x32xf32>
    %40 = arith.addf %38, %39 : vector<1x32xf32>
    %41 = arith.negf %40 : vector<1x32xf32>
    %42 = math.exp %41 : vector<1x32xf32>
    %cst_24 = arith.constant 1.000000e+00 : f32
    %43 = vector.broadcast %cst_24 : f32 to vector<1x32xf32>
    %44 = arith.addf %43, %42 : vector<1x32xf32>
    %45 = arith.divf %43, %44 : vector<1x32xf32>
    %46 = vector.extract_strided_slice %34 {offsets = [0, 32], sizes = [1, 32], strides = [1, 1]} : vector<1x96xf32> to vector<1x32xf32>
    %47 = vector.extract_strided_slice %37 {offsets = [0, 32], sizes = [1, 32], strides = [1, 1]} : vector<1x96xf32> to vector<1x32xf32>
    %48 = arith.addf %46, %47 : vector<1x32xf32>
    %49 = arith.negf %48 : vector<1x32xf32>
    %50 = math.exp %49 : vector<1x32xf32>
    %cst_25 = arith.constant 1.000000e+00 : f32
    %51 = vector.broadcast %cst_25 : f32 to vector<1x32xf32>
    %52 = arith.addf %51, %50 : vector<1x32xf32>
    %53 = arith.divf %51, %52 : vector<1x32xf32>
    %54 = vector.extract_strided_slice %34 {offsets = [0, 64], sizes = [1, 32], strides = [1, 1]} : vector<1x96xf32> to vector<1x32xf32>
    %55 = vector.extract_strided_slice %37 {offsets = [0, 64], sizes = [1, 32], strides = [1, 1]} : vector<1x96xf32> to vector<1x32xf32>
    %56 = arith.mulf %45, %55 : vector<1x32xf32>
    %57 = arith.addf %54, %56 : vector<1x32xf32>
    %58 = math.tanh %57 : vector<1x32xf32>
    %cst_26 = arith.constant 1.000000e+00 : f32
    %59 = vector.broadcast %cst_26 : f32 to vector<1x32xf32>
    %60 = arith.subf %59, %53 : vector<1x32xf32>
    %61 = arith.mulf %60, %58 : vector<1x32xf32>
    %62 = arith.mulf %53, %33 : vector<1x32xf32>
    %63 = arith.addf %61, %62 : vector<1x32xf32>
    %c0_27 = arith.constant 0 : index
    %c0_28 = arith.constant 0 : index
    %64 = vector.load %arg8[%c0_27, %c0_28] : memref<16x32xf32, #tpu.memory_space<vmem>>, vector<1x32xf32>
    tpu.vector_store %arg8[%c0_27, %c0_28], %63 {strides = array<i32>} : memref<16x32xf32, #tpu.memory_space<vmem>>, vector<1x32xf32>,
    %65 = vector.extract_strided_slice %31 {offsets = [1, 0], sizes = [1, 96], strides = [1, 1]} : vector<16x96xf32> to vector<1x96xf32>
    %66 = arith.truncf %63 : vector<1x32xf32> to vector<1x32xbf16>
    %cst_29 = arith.constant dense<0.000000e+00> : vector<1x96xf32>
    %67 = tpu.matmul %66, %32, %cst_29 {dimension_numbers = #tpu.dot_dimension_numbers<[1], [0], [0], [1], [0, 0, 1, 1], [], []>} : vector<1x32xbf16>, vector<32x96xbf16>, vector<1x96xf32> -> vector<1x96xf32>
    %68 = arith.addf %67, %2 : vector<1x96xf32>
    %69 = vector.extract_strided_slice %65 {offsets = [0, 0], sizes = [1, 32], strides = [1, 1]} : vector<1x96xf32> to vector<1x32xf32>
    %70 = vector.extract_strided_slice %68 {offsets = [0, 0], sizes = [1, 32], strides = [1, 1]} : vector<1x96xf32> to vector<1x32xf32>
    %71 = arith.addf %69, %70 : vector<1x32xf32>
    %72 = arith.negf %71 : vector<1x32xf32>
    %73 = math.exp %72 : vector<1x32xf32>
    %cst_30 = arith.constant 1.000000e+00 : f32
    %74 = vector.broadcast %cst_30 : f32 to vector<1x32xf32>
    %75 = arith.addf %74, %73 : vector<1x32xf32>
    %76 = arith.divf %74, %75 : vector<1x32xf32>
    %77 = vector.extract_strided_slice %65 {offsets = [0, 32], sizes = [1, 32], strides = [1, 1]} : vector<1x96xf32> to vector<1x32xf32>
    %78 = vector.extract_strided_slice %68 {offsets = [0, 32], sizes = [1, 32], strides = [1, 1]} : vector<1x96xf32> to vector<1x32xf32>
    %79 = arith.addf %77, %78 : vector<1x32xf32>
    %80 = arith.negf %79 : vector<1x32xf32>
    %81 = math.exp %80 : vector<1x32xf32>
    %cst_31 = arith.constant 1.000000e+00 : f32
    %82 = vector.broadcast %cst_31 : f32 to vector<1x32xf32>
    %83 = arith.addf %82, %81 : vector<1x32xf32>
    %84 = arith.divf %82, %83 : vector<1x32xf32>
    %85 = vector.extract_strided_slice %65 {offsets = [0, 64], sizes = [1, 32], strides = [1, 1]} : vector<1x96xf32> to vector<1x32xf32>
    %86 = vector.extract_strided_slice %68 {offsets = [0, 64], sizes = [1, 32], strides = [1, 1]} : vector<1x96xf32> to vector<1x32xf32>
    %87 = arith.mulf %76, %86 : vector<1x32xf32>
    %88 = arith.addf %85, %87 : vector<1x32xf32>
    %89 = math.tanh %88 : vector<1x32xf32>
    %cst_32 = arith.constant 1.000000e+00 : f32
    %90 = vector.broadcast %cst_32 : f32 to vector<1x32xf32>
    %91 = arith.subf %90, %84 : vector<1x32xf32>
    %92 = arith.mulf %91, %89 : vector<1x32xf32>
    %93 = arith.mulf %84, %63 : vector<1x32xf32>
    %94 = arith.addf %92, %93 : vector<1x32xf32>
    %c1_33 = arith.constant 1 : index
    %c0_34 = arith.constant 0 : index
    %95 = vector.load %arg8[%c1_33, %c0_34] : memref<16x32xf32, #tpu.memory_space<vmem>>, vector<1x32xf32>
    tpu.vector_store %arg8[%c1_33, %c0_34], %94 {strides = array<i32>} : memref<16x32xf32, #tpu.memory_space<vmem>>, vector<1x32xf32>,
    %96 = vector.extract_strided_slice %31 {offsets = [2, 0], sizes = [1, 96], strides = [1, 1]} : vector<16x96xf32> to vector<1x96xf32>
    %97 = arith.truncf %94 : vector<1x32xf32> to vector<1x32xbf16>
    %cst_35 = arith.constant dense<0.000000e+00> : vector<1x96xf32>
    %98 = tpu.matmul %97, %32, %cst_35 {dimension_numbers = #tpu.dot_dimension_numbers<[1], [0], [0], [1], [0, 0, 1, 1], [], []>} : vector<1x32xbf16>, vector<32x96xbf16>, vector<1x96xf32> -> vector<1x96xf32>
    %99 = arith.addf %98, %2 : vector<1x96xf32>
    %100 = vector.extract_strided_slice %96 {offsets = [0, 0], sizes = [1, 32], strides = [1, 1]} : vector<1x96xf32> to vector<1x32xf32>
    %101 = vector.extract_strided_slice %99 {offsets = [0, 0], sizes = [1, 32], strides = [1, 1]} : vector<1x96xf32> to vector<1x32xf32>
    %102 = arith.addf %100, %101 : vector<1x32xf32>
    %103 = arith.negf %102 : vector<1x32xf32>
    %104 = math.exp %103 : vector<1x32xf32>
    %cst_36 = arith.constant 1.000000e+00 : f32
    %105 = vector.broadcast %cst_36 : f32 to vector<1x32xf32>
    %106 = arith.addf %105, %104 : vector<1x32xf32>
    %107 = arith.divf %105, %106 : vector<1x32xf32>
    %108 = vector.extract_strided_slice %96 {offsets = [0, 32], sizes = [1, 32], strides = [1, 1]} : vector<1x96xf32> to vector<1x32xf32>
    %109 = vector.extract_strided_slice %99 {offsets = [0, 32], sizes = [1, 32], strides = [1, 1]} : vector<1x96xf32> to vector<1x32xf32>
    %110 = arith.addf %108, %109 : vector<1x32xf32>
    %111 = arith.negf %110 : vector<1x32xf32>
    %112 = math.exp %111 : vector<1x32xf32>
    %cst_37 = arith.constant 1.000000e+00 : f32
    %113 = vector.broadcast %cst_37 : f32 to vector<1x32xf32>
    %114 = arith.addf %113, %112 : vector<1x32xf32>
    %115 = arith.divf %113, %114 : vector<1x32xf32>
    %116 = vector.extract_strided_slice %96 {offsets = [0, 64], sizes = [1, 32], strides = [1, 1]} : vector<1x96xf32> to vector<1x32xf32>
    %117 = vector.extract_strided_slice %99 {offsets = [0, 64], sizes = [1, 32], strides = [1, 1]} : vector<1x96xf32> to vector<1x32xf32>
    %118 = arith.mulf %107, %117 : vector<1x32xf32>
    %119 = arith.addf %116, %118 : vector<1x32xf32>
    %120 = math.tanh %119 : vector<1x32xf32>
    %cst_38 = arith.constant 1.000000e+00 : f32
    %121 = vector.broadcast %cst_38 : f32 to vector<1x32xf32>
    %122 = arith.subf %121, %115 : vector<1x32xf32>
    %123 = arith.mulf %122, %120 : vector<1x32xf32>
    %124 = arith.mulf %115, %94 : vector<1x32xf32>
    %125 = arith.addf %123, %124 : vector<1x32xf32>
    %c2_39 = arith.constant 2 : index
    %c0_40 = arith.constant 0 : index
    %126 = vector.load %arg8[%c2_39, %c0_40] : memref<16x32xf32, #tpu.memory_space<vmem>>, vector<1x32xf32>
    tpu.vector_store %arg8[%c2_39, %c0_40], %125 {strides = array<i32>} : memref<16x32xf32, #tpu.memory_space<vmem>>, vector<1x32xf32>,
    %127 = vector.extract_strided_slice %31 {offsets = [3, 0], sizes = [1, 96], strides = [1, 1]} : vector<16x96xf32> to vector<1x96xf32>
    %128 = arith.truncf %125 : vector<1x32xf32> to vector<1x32xbf16>
    %cst_41 = arith.constant dense<0.000000e+00> : vector<1x96xf32>
    %129 = tpu.matmul %128, %32, %cst_41 {dimension_numbers = #tpu.dot_dimension_numbers<[1], [0], [0], [1], [0, 0, 1, 1], [], []>} : vector<1x32xbf16>, vector<32x96xbf16>, vector<1x96xf32> -> vector<1x96xf32>
    %130 = arith.addf %129, %2 : vector<1x96xf32>
    %131 = vector.extract_strided_slice %127 {offsets = [0, 0], sizes = [1, 32], strides = [1, 1]} : vector<1x96xf32> to vector<1x32xf32>
    %132 = vector.extract_strided_slice %130 {offsets = [0, 0], sizes = [1, 32], strides = [1, 1]} : vector<1x96xf32> to vector<1x32xf32>
    %133 = arith.addf %131, %132 : vector<1x32xf32>
    %134 = arith.negf %133 : vector<1x32xf32>
    %135 = math.exp %134 : vector<1x32xf32>
    %cst_42 = arith.constant 1.000000e+00 : f32
    %136 = vector.broadcast %cst_42 : f32 to vector<1x32xf32>
    %137 = arith.addf %136, %135 : vector<1x32xf32>
    %138 = arith.divf %136, %137 : vector<1x32xf32>
    %139 = vector.extract_strided_slice %127 {offsets = [0, 32], sizes = [1, 32], strides = [1, 1]} : vector<1x96xf32> to vector<1x32xf32>
    %140 = vector.extract_strided_slice %130 {offsets = [0, 32], sizes = [1, 32], strides = [1, 1]} : vector<1x96xf32> to vector<1x32xf32>
    %141 = arith.addf %139, %140 : vector<1x32xf32>
    %142 = arith.negf %141 : vector<1x32xf32>
    %143 = math.exp %142 : vector<1x32xf32>
    %cst_43 = arith.constant 1.000000e+00 : f32
    %144 = vector.broadcast %cst_43 : f32 to vector<1x32xf32>
    %145 = arith.addf %144, %143 : vector<1x32xf32>
    %146 = arith.divf %144, %145 : vector<1x32xf32>
    %147 = vector.extract_strided_slice %127 {offsets = [0, 64], sizes = [1, 32], strides = [1, 1]} : vector<1x96xf32> to vector<1x32xf32>
    %148 = vector.extract_strided_slice %130 {offsets = [0, 64], sizes = [1, 32], strides = [1, 1]} : vector<1x96xf32> to vector<1x32xf32>
    %149 = arith.mulf %138, %148 : vector<1x32xf32>
    %150 = arith.addf %147, %149 : vector<1x32xf32>
    %151 = math.tanh %150 : vector<1x32xf32>
    %cst_44 = arith.constant 1.000000e+00 : f32
    %152 = vector.broadcast %cst_44 : f32 to vector<1x32xf32>
    %153 = arith.subf %152, %146 : vector<1x32xf32>
    %154 = arith.mulf %153, %151 : vector<1x32xf32>
    %155 = arith.mulf %146, %125 : vector<1x32xf32>
    %156 = arith.addf %154, %155 : vector<1x32xf32>
    %c3_45 = arith.constant 3 : index
    %c0_46 = arith.constant 0 : index
    %157 = vector.load %arg8[%c3_45, %c0_46] : memref<16x32xf32, #tpu.memory_space<vmem>>, vector<1x32xf32>
    tpu.vector_store %arg8[%c3_45, %c0_46], %156 {strides = array<i32>} : memref<16x32xf32, #tpu.memory_space<vmem>>, vector<1x32xf32>,
    %158 = vector.extract_strided_slice %31 {offsets = [4, 0], sizes = [1, 96], strides = [1, 1]} : vector<16x96xf32> to vector<1x96xf32>
    %159 = arith.truncf %156 : vector<1x32xf32> to vector<1x32xbf16>
    %cst_47 = arith.constant dense<0.000000e+00> : vector<1x96xf32>
    %160 = tpu.matmul %159, %32, %cst_47 {dimension_numbers = #tpu.dot_dimension_numbers<[1], [0], [0], [1], [0, 0, 1, 1], [], []>} : vector<1x32xbf16>, vector<32x96xbf16>, vector<1x96xf32> -> vector<1x96xf32>
    %161 = arith.addf %160, %2 : vector<1x96xf32>
    %162 = vector.extract_strided_slice %158 {offsets = [0, 0], sizes = [1, 32], strides = [1, 1]} : vector<1x96xf32> to vector<1x32xf32>
    %163 = vector.extract_strided_slice %161 {offsets = [0, 0], sizes = [1, 32], strides = [1, 1]} : vector<1x96xf32> to vector<1x32xf32>
    %164 = arith.addf %162, %163 : vector<1x32xf32>
    %165 = arith.negf %164 : vector<1x32xf32>
    %166 = math.exp %165 : vector<1x32xf32>
    %cst_48 = arith.constant 1.000000e+00 : f32
    %167 = vector.broadcast %cst_48 : f32 to vector<1x32xf32>
    %168 = arith.addf %167, %166 : vector<1x32xf32>
    %169 = arith.divf %167, %168 : vector<1x32xf32>
    %170 = vector.extract_strided_slice %158 {offsets = [0, 32], sizes = [1, 32], strides = [1, 1]} : vector<1x96xf32> to vector<1x32xf32>
    %171 = vector.extract_strided_slice %161 {offsets = [0, 32], sizes = [1, 32], strides = [1, 1]} : vector<1x96xf32> to vector<1x32xf32>
    %172 = arith.addf %170, %171 : vector<1x32xf32>
    %173 = arith.negf %172 : vector<1x32xf32>
    %174 = math.exp %173 : vector<1x32xf32>
    %cst_49 = arith.constant 1.000000e+00 : f32
    %175 = vector.broadcast %cst_49 : f32 to vector<1x32xf32>
    %176 = arith.addf %175, %174 : vector<1x32xf32>
    %177 = arith.divf %175, %176 : vector<1x32xf32>
    %178 = vector.extract_strided_slice %158 {offsets = [0, 64], sizes = [1, 32], strides = [1, 1]} : vector<1x96xf32> to vector<1x32xf32>
    %179 = vector.extract_strided_slice %161 {offsets = [0, 64], sizes = [1, 32], strides = [1, 1]} : vector<1x96xf32> to vector<1x32xf32>
    %180 = arith.mulf %169, %179 : vector<1x32xf32>
    %181 = arith.addf %178, %180 : vector<1x32xf32>
    %182 = math.tanh %181 : vector<1x32xf32>
    %cst_50 = arith.constant 1.000000e+00 : f32
    %183 = vector.broadcast %cst_50 : f32 to vector<1x32xf32>
    %184 = arith.subf %183, %177 : vector<1x32xf32>
    %185 = arith.mulf %184, %182 : vector<1x32xf32>
    %186 = arith.mulf %177, %156 : vector<1x32xf32>
    %187 = arith.addf %185, %186 : vector<1x32xf32>
    %c4_51 = arith.constant 4 : index
    %c0_52 = arith.constant 0 : index
    %188 = vector.load %arg8[%c4_51, %c0_52] : memref<16x32xf32, #tpu.memory_space<vmem>>, vector<1x32xf32>
    tpu.vector_store %arg8[%c4_51, %c0_52], %187 {strides = array<i32>} : memref<16x32xf32, #tpu.memory_space<vmem>>, vector<1x32xf32>,
    %189 = vector.extract_strided_slice %31 {offsets = [5, 0], sizes = [1, 96], strides = [1, 1]} : vector<16x96xf32> to vector<1x96xf32>
    %190 = arith.truncf %187 : vector<1x32xf32> to vector<1x32xbf16>
    %cst_53 = arith.constant dense<0.000000e+00> : vector<1x96xf32>
    %191 = tpu.matmul %190, %32, %cst_53 {dimension_numbers = #tpu.dot_dimension_numbers<[1], [0], [0], [1], [0, 0, 1, 1], [], []>} : vector<1x32xbf16>, vector<32x96xbf16>, vector<1x96xf32> -> vector<1x96xf32>
    %192 = arith.addf %191, %2 : vector<1x96xf32>
    %193 = vector.extract_strided_slice %189 {offsets = [0, 0], sizes = [1, 32], strides = [1, 1]} : vector<1x96xf32> to vector<1x32xf32>
    %194 = vector.extract_strided_slice %192 {offsets = [0, 0], sizes = [1, 32], strides = [1, 1]} : vector<1x96xf32> to vector<1x32xf32>
    %195 = arith.addf %193, %194 : vector<1x32xf32>
    %196 = arith.negf %195 : vector<1x32xf32>
    %197 = math.exp %196 : vector<1x32xf32>
    %cst_54 = arith.constant 1.000000e+00 : f32
    %198 = vector.broadcast %cst_54 : f32 to vector<1x32xf32>
    %199 = arith.addf %198, %197 : vector<1x32xf32>
    %200 = arith.divf %198, %199 : vector<1x32xf32>
    %201 = vector.extract_strided_slice %189 {offsets = [0, 32], sizes = [1, 32], strides = [1, 1]} : vector<1x96xf32> to vector<1x32xf32>
    %202 = vector.extract_strided_slice %192 {offsets = [0, 32], sizes = [1, 32], strides = [1, 1]} : vector<1x96xf32> to vector<1x32xf32>
    %203 = arith.addf %201, %202 : vector<1x32xf32>
    %204 = arith.negf %203 : vector<1x32xf32>
    %205 = math.exp %204 : vector<1x32xf32>
    %cst_55 = arith.constant 1.000000e+00 : f32
    %206 = vector.broadcast %cst_55 : f32 to vector<1x32xf32>
    %207 = arith.addf %206, %205 : vector<1x32xf32>
    %208 = arith.divf %206, %207 : vector<1x32xf32>
    %209 = vector.extract_strided_slice %189 {offsets = [0, 64], sizes = [1, 32], strides = [1, 1]} : vector<1x96xf32> to vector<1x32xf32>
    %210 = vector.extract_strided_slice %192 {offsets = [0, 64], sizes = [1, 32], strides = [1, 1]} : vector<1x96xf32> to vector<1x32xf32>
    %211 = arith.mulf %200, %210 : vector<1x32xf32>
    %212 = arith.addf %209, %211 : vector<1x32xf32>
    %213 = math.tanh %212 : vector<1x32xf32>
    %cst_56 = arith.constant 1.000000e+00 : f32
    %214 = vector.broadcast %cst_56 : f32 to vector<1x32xf32>
    %215 = arith.subf %214, %208 : vector<1x32xf32>
    %216 = arith.mulf %215, %213 : vector<1x32xf32>
    %217 = arith.mulf %208, %187 : vector<1x32xf32>
    %218 = arith.addf %216, %217 : vector<1x32xf32>
    %c5 = arith.constant 5 : index
    %c0_57 = arith.constant 0 : index
    %219 = vector.load %arg8[%c5, %c0_57] : memref<16x32xf32, #tpu.memory_space<vmem>>, vector<1x32xf32>
    tpu.vector_store %arg8[%c5, %c0_57], %218 {strides = array<i32>} : memref<16x32xf32, #tpu.memory_space<vmem>>, vector<1x32xf32>,
    %220 = vector.extract_strided_slice %31 {offsets = [6, 0], sizes = [1, 96], strides = [1, 1]} : vector<16x96xf32> to vector<1x96xf32>
    %221 = arith.truncf %218 : vector<1x32xf32> to vector<1x32xbf16>
    %cst_58 = arith.constant dense<0.000000e+00> : vector<1x96xf32>
    %222 = tpu.matmul %221, %32, %cst_58 {dimension_numbers = #tpu.dot_dimension_numbers<[1], [0], [0], [1], [0, 0, 1, 1], [], []>} : vector<1x32xbf16>, vector<32x96xbf16>, vector<1x96xf32> -> vector<1x96xf32>
    %223 = arith.addf %222, %2 : vector<1x96xf32>
    %224 = vector.extract_strided_slice %220 {offsets = [0, 0], sizes = [1, 32], strides = [1, 1]} : vector<1x96xf32> to vector<1x32xf32>
    %225 = vector.extract_strided_slice %223 {offsets = [0, 0], sizes = [1, 32], strides = [1, 1]} : vector<1x96xf32> to vector<1x32xf32>
    %226 = arith.addf %224, %225 : vector<1x32xf32>
    %227 = arith.negf %226 : vector<1x32xf32>
    %228 = math.exp %227 : vector<1x32xf32>
    %cst_59 = arith.constant 1.000000e+00 : f32
    %229 = vector.broadcast %cst_59 : f32 to vector<1x32xf32>
    %230 = arith.addf %229, %228 : vector<1x32xf32>
    %231 = arith.divf %229, %230 : vector<1x32xf32>
    %232 = vector.extract_strided_slice %220 {offsets = [0, 32], sizes = [1, 32], strides = [1, 1]} : vector<1x96xf32> to vector<1x32xf32>
    %233 = vector.extract_strided_slice %223 {offsets = [0, 32], sizes = [1, 32], strides = [1, 1]} : vector<1x96xf32> to vector<1x32xf32>
    %234 = arith.addf %232, %233 : vector<1x32xf32>
    %235 = arith.negf %234 : vector<1x32xf32>
    %236 = math.exp %235 : vector<1x32xf32>
    %cst_60 = arith.constant 1.000000e+00 : f32
    %237 = vector.broadcast %cst_60 : f32 to vector<1x32xf32>
    %238 = arith.addf %237, %236 : vector<1x32xf32>
    %239 = arith.divf %237, %238 : vector<1x32xf32>
    %240 = vector.extract_strided_slice %220 {offsets = [0, 64], sizes = [1, 32], strides = [1, 1]} : vector<1x96xf32> to vector<1x32xf32>
    %241 = vector.extract_strided_slice %223 {offsets = [0, 64], sizes = [1, 32], strides = [1, 1]} : vector<1x96xf32> to vector<1x32xf32>
    %242 = arith.mulf %231, %241 : vector<1x32xf32>
    %243 = arith.addf %240, %242 : vector<1x32xf32>
    %244 = math.tanh %243 : vector<1x32xf32>
    %cst_61 = arith.constant 1.000000e+00 : f32
    %245 = vector.broadcast %cst_61 : f32 to vector<1x32xf32>
    %246 = arith.subf %245, %239 : vector<1x32xf32>
    %247 = arith.mulf %246, %244 : vector<1x32xf32>
    %248 = arith.mulf %239, %218 : vector<1x32xf32>
    %249 = arith.addf %247, %248 : vector<1x32xf32>
    %c6 = arith.constant 6 : index
    %c0_62 = arith.constant 0 : index
    %250 = vector.load %arg8[%c6, %c0_62] : memref<16x32xf32, #tpu.memory_space<vmem>>, vector<1x32xf32>
    tpu.vector_store %arg8[%c6, %c0_62], %249 {strides = array<i32>} : memref<16x32xf32, #tpu.memory_space<vmem>>, vector<1x32xf32>,
    %251 = vector.extract_strided_slice %31 {offsets = [7, 0], sizes = [1, 96], strides = [1, 1]} : vector<16x96xf32> to vector<1x96xf32>
    %252 = arith.truncf %249 : vector<1x32xf32> to vector<1x32xbf16>
    %cst_63 = arith.constant dense<0.000000e+00> : vector<1x96xf32>
    %253 = tpu.matmul %252, %32, %cst_63 {dimension_numbers = #tpu.dot_dimension_numbers<[1], [0], [0], [1], [0, 0, 1, 1], [], []>} : vector<1x32xbf16>, vector<32x96xbf16>, vector<1x96xf32> -> vector<1x96xf32>
    %254 = arith.addf %253, %2 : vector<1x96xf32>
    %255 = vector.extract_strided_slice %251 {offsets = [0, 0], sizes = [1, 32], strides = [1, 1]} : vector<1x96xf32> to vector<1x32xf32>
    %256 = vector.extract_strided_slice %254 {offsets = [0, 0], sizes = [1, 32], strides = [1, 1]} : vector<1x96xf32> to vector<1x32xf32>
    %257 = arith.addf %255, %256 : vector<1x32xf32>
    %258 = arith.negf %257 : vector<1x32xf32>
    %259 = math.exp %258 : vector<1x32xf32>
    %cst_64 = arith.constant 1.000000e+00 : f32
    %260 = vector.broadcast %cst_64 : f32 to vector<1x32xf32>
    %261 = arith.addf %260, %259 : vector<1x32xf32>
    %262 = arith.divf %260, %261 : vector<1x32xf32>
    %263 = vector.extract_strided_slice %251 {offsets = [0, 32], sizes = [1, 32], strides = [1, 1]} : vector<1x96xf32> to vector<1x32xf32>
    %264 = vector.extract_strided_slice %254 {offsets = [0, 32], sizes = [1, 32], strides = [1, 1]} : vector<1x96xf32> to vector<1x32xf32>
    %265 = arith.addf %263, %264 : vector<1x32xf32>
    %266 = arith.negf %265 : vector<1x32xf32>
    %267 = math.exp %266 : vector<1x32xf32>
    %cst_65 = arith.constant 1.000000e+00 : f32
    %268 = vector.broadcast %cst_65 : f32 to vector<1x32xf32>
    %269 = arith.addf %268, %267 : vector<1x32xf32>
    %270 = arith.divf %268, %269 : vector<1x32xf32>
    %271 = vector.extract_strided_slice %251 {offsets = [0, 64], sizes = [1, 32], strides = [1, 1]} : vector<1x96xf32> to vector<1x32xf32>
    %272 = vector.extract_strided_slice %254 {offsets = [0, 64], sizes = [1, 32], strides = [1, 1]} : vector<1x96xf32> to vector<1x32xf32>
    %273 = arith.mulf %262, %272 : vector<1x32xf32>
    %274 = arith.addf %271, %273 : vector<1x32xf32>
    %275 = math.tanh %274 : vector<1x32xf32>
    %cst_66 = arith.constant 1.000000e+00 : f32
    %276 = vector.broadcast %cst_66 : f32 to vector<1x32xf32>
    %277 = arith.subf %276, %270 : vector<1x32xf32>
    %278 = arith.mulf %277, %275 : vector<1x32xf32>
    %279 = arith.mulf %270, %249 : vector<1x32xf32>
    %280 = arith.addf %278, %279 : vector<1x32xf32>
    %c7 = arith.constant 7 : index
    %c0_67 = arith.constant 0 : index
    %281 = vector.load %arg8[%c7, %c0_67] : memref<16x32xf32, #tpu.memory_space<vmem>>, vector<1x32xf32>
    tpu.vector_store %arg8[%c7, %c0_67], %280 {strides = array<i32>} : memref<16x32xf32, #tpu.memory_space<vmem>>, vector<1x32xf32>,
    %282 = vector.extract_strided_slice %31 {offsets = [8, 0], sizes = [1, 96], strides = [1, 1]} : vector<16x96xf32> to vector<1x96xf32>
    %283 = arith.truncf %280 : vector<1x32xf32> to vector<1x32xbf16>
    %cst_68 = arith.constant dense<0.000000e+00> : vector<1x96xf32>
    %284 = tpu.matmul %283, %32, %cst_68 {dimension_numbers = #tpu.dot_dimension_numbers<[1], [0], [0], [1], [0, 0, 1, 1], [], []>} : vector<1x32xbf16>, vector<32x96xbf16>, vector<1x96xf32> -> vector<1x96xf32>
    %285 = arith.addf %284, %2 : vector<1x96xf32>
    %286 = vector.extract_strided_slice %282 {offsets = [0, 0], sizes = [1, 32], strides = [1, 1]} : vector<1x96xf32> to vector<1x32xf32>
    %287 = vector.extract_strided_slice %285 {offsets = [0, 0], sizes = [1, 32], strides = [1, 1]} : vector<1x96xf32> to vector<1x32xf32>
    %288 = arith.addf %286, %287 : vector<1x32xf32>
    %289 = arith.negf %288 : vector<1x32xf32>
    %290 = math.exp %289 : vector<1x32xf32>
    %cst_69 = arith.constant 1.000000e+00 : f32
    %291 = vector.broadcast %cst_69 : f32 to vector<1x32xf32>
    %292 = arith.addf %291, %290 : vector<1x32xf32>
    %293 = arith.divf %291, %292 : vector<1x32xf32>
    %294 = vector.extract_strided_slice %282 {offsets = [0, 32], sizes = [1, 32], strides = [1, 1]} : vector<1x96xf32> to vector<1x32xf32>
    %295 = vector.extract_strided_slice %285 {offsets = [0, 32], sizes = [1, 32], strides = [1, 1]} : vector<1x96xf32> to vector<1x32xf32>
    %296 = arith.addf %294, %295 : vector<1x32xf32>
    %297 = arith.negf %296 : vector<1x32xf32>
    %298 = math.exp %297 : vector<1x32xf32>
    %cst_70 = arith.constant 1.000000e+00 : f32
    %299 = vector.broadcast %cst_70 : f32 to vector<1x32xf32>
    %300 = arith.addf %299, %298 : vector<1x32xf32>
    %301 = arith.divf %299, %300 : vector<1x32xf32>
    %302 = vector.extract_strided_slice %282 {offsets = [0, 64], sizes = [1, 32], strides = [1, 1]} : vector<1x96xf32> to vector<1x32xf32>
    %303 = vector.extract_strided_slice %285 {offsets = [0, 64], sizes = [1, 32], strides = [1, 1]} : vector<1x96xf32> to vector<1x32xf32>
    %304 = arith.mulf %293, %303 : vector<1x32xf32>
    %305 = arith.addf %302, %304 : vector<1x32xf32>
    %306 = math.tanh %305 : vector<1x32xf32>
    %cst_71 = arith.constant 1.000000e+00 : f32
    %307 = vector.broadcast %cst_71 : f32 to vector<1x32xf32>
    %308 = arith.subf %307, %301 : vector<1x32xf32>
    %309 = arith.mulf %308, %306 : vector<1x32xf32>
    %310 = arith.mulf %301, %280 : vector<1x32xf32>
    %311 = arith.addf %309, %310 : vector<1x32xf32>
    %c8 = arith.constant 8 : index
    %c0_72 = arith.constant 0 : index
    %312 = vector.load %arg8[%c8, %c0_72] : memref<16x32xf32, #tpu.memory_space<vmem>>, vector<1x32xf32>
    tpu.vector_store %arg8[%c8, %c0_72], %311 {strides = array<i32>} : memref<16x32xf32, #tpu.memory_space<vmem>>, vector<1x32xf32>,
    %313 = vector.extract_strided_slice %31 {offsets = [9, 0], sizes = [1, 96], strides = [1, 1]} : vector<16x96xf32> to vector<1x96xf32>
    %314 = arith.truncf %311 : vector<1x32xf32> to vector<1x32xbf16>
    %cst_73 = arith.constant dense<0.000000e+00> : vector<1x96xf32>
    %315 = tpu.matmul %314, %32, %cst_73 {dimension_numbers = #tpu.dot_dimension_numbers<[1], [0], [0], [1], [0, 0, 1, 1], [], []>} : vector<1x32xbf16>, vector<32x96xbf16>, vector<1x96xf32> -> vector<1x96xf32>
    %316 = arith.addf %315, %2 : vector<1x96xf32>
    %317 = vector.extract_strided_slice %313 {offsets = [0, 0], sizes = [1, 32], strides = [1, 1]} : vector<1x96xf32> to vector<1x32xf32>
    %318 = vector.extract_strided_slice %316 {offsets = [0, 0], sizes = [1, 32], strides = [1, 1]} : vector<1x96xf32> to vector<1x32xf32>
    %319 = arith.addf %317, %318 : vector<1x32xf32>
    %320 = arith.negf %319 : vector<1x32xf32>
    %321 = math.exp %320 : vector<1x32xf32>
    %cst_74 = arith.constant 1.000000e+00 : f32
    %322 = vector.broadcast %cst_74 : f32 to vector<1x32xf32>
    %323 = arith.addf %322, %321 : vector<1x32xf32>
    %324 = arith.divf %322, %323 : vector<1x32xf32>
    %325 = vector.extract_strided_slice %313 {offsets = [0, 32], sizes = [1, 32], strides = [1, 1]} : vector<1x96xf32> to vector<1x32xf32>
    %326 = vector.extract_strided_slice %316 {offsets = [0, 32], sizes = [1, 32], strides = [1, 1]} : vector<1x96xf32> to vector<1x32xf32>
    %327 = arith.addf %325, %326 : vector<1x32xf32>
    %328 = arith.negf %327 : vector<1x32xf32>
    %329 = math.exp %328 : vector<1x32xf32>
    %cst_75 = arith.constant 1.000000e+00 : f32
    %330 = vector.broadcast %cst_75 : f32 to vector<1x32xf32>
    %331 = arith.addf %330, %329 : vector<1x32xf32>
    %332 = arith.divf %330, %331 : vector<1x32xf32>
    %333 = vector.extract_strided_slice %313 {offsets = [0, 64], sizes = [1, 32], strides = [1, 1]} : vector<1x96xf32> to vector<1x32xf32>
    %334 = vector.extract_strided_slice %316 {offsets = [0, 64], sizes = [1, 32], strides = [1, 1]} : vector<1x96xf32> to vector<1x32xf32>
    %335 = arith.mulf %324, %334 : vector<1x32xf32>
    %336 = arith.addf %333, %335 : vector<1x32xf32>
    %337 = math.tanh %336 : vector<1x32xf32>
    %cst_76 = arith.constant 1.000000e+00 : f32
    %338 = vector.broadcast %cst_76 : f32 to vector<1x32xf32>
    %339 = arith.subf %338, %332 : vector<1x32xf32>
    %340 = arith.mulf %339, %337 : vector<1x32xf32>
    %341 = arith.mulf %332, %311 : vector<1x32xf32>
    %342 = arith.addf %340, %341 : vector<1x32xf32>
    %c9 = arith.constant 9 : index
    %c0_77 = arith.constant 0 : index
    %343 = vector.load %arg8[%c9, %c0_77] : memref<16x32xf32, #tpu.memory_space<vmem>>, vector<1x32xf32>
    tpu.vector_store %arg8[%c9, %c0_77], %342 {strides = array<i32>} : memref<16x32xf32, #tpu.memory_space<vmem>>, vector<1x32xf32>,
    %344 = vector.extract_strided_slice %31 {offsets = [10, 0], sizes = [1, 96], strides = [1, 1]} : vector<16x96xf32> to vector<1x96xf32>
    %345 = arith.truncf %342 : vector<1x32xf32> to vector<1x32xbf16>
    %cst_78 = arith.constant dense<0.000000e+00> : vector<1x96xf32>
    %346 = tpu.matmul %345, %32, %cst_78 {dimension_numbers = #tpu.dot_dimension_numbers<[1], [0], [0], [1], [0, 0, 1, 1], [], []>} : vector<1x32xbf16>, vector<32x96xbf16>, vector<1x96xf32> -> vector<1x96xf32>
    %347 = arith.addf %346, %2 : vector<1x96xf32>
    %348 = vector.extract_strided_slice %344 {offsets = [0, 0], sizes = [1, 32], strides = [1, 1]} : vector<1x96xf32> to vector<1x32xf32>
    %349 = vector.extract_strided_slice %347 {offsets = [0, 0], sizes = [1, 32], strides = [1, 1]} : vector<1x96xf32> to vector<1x32xf32>
    %350 = arith.addf %348, %349 : vector<1x32xf32>
    %351 = arith.negf %350 : vector<1x32xf32>
    %352 = math.exp %351 : vector<1x32xf32>
    %cst_79 = arith.constant 1.000000e+00 : f32
    %353 = vector.broadcast %cst_79 : f32 to vector<1x32xf32>
    %354 = arith.addf %353, %352 : vector<1x32xf32>
    %355 = arith.divf %353, %354 : vector<1x32xf32>
    %356 = vector.extract_strided_slice %344 {offsets = [0, 32], sizes = [1, 32], strides = [1, 1]} : vector<1x96xf32> to vector<1x32xf32>
    %357 = vector.extract_strided_slice %347 {offsets = [0, 32], sizes = [1, 32], strides = [1, 1]} : vector<1x96xf32> to vector<1x32xf32>
    %358 = arith.addf %356, %357 : vector<1x32xf32>
    %359 = arith.negf %358 : vector<1x32xf32>
    %360 = math.exp %359 : vector<1x32xf32>
    %cst_80 = arith.constant 1.000000e+00 : f32
    %361 = vector.broadcast %cst_80 : f32 to vector<1x32xf32>
    %362 = arith.addf %361, %360 : vector<1x32xf32>
    %363 = arith.divf %361, %362 : vector<1x32xf32>
    %364 = vector.extract_strided_slice %344 {offsets = [0, 64], sizes = [1, 32], strides = [1, 1]} : vector<1x96xf32> to vector<1x32xf32>
    %365 = vector.extract_strided_slice %347 {offsets = [0, 64], sizes = [1, 32], strides = [1, 1]} : vector<1x96xf32> to vector<1x32xf32>
    %366 = arith.mulf %355, %365 : vector<1x32xf32>
    %367 = arith.addf %364, %366 : vector<1x32xf32>
    %368 = math.tanh %367 : vector<1x32xf32>
    %cst_81 = arith.constant 1.000000e+00 : f32
    %369 = vector.broadcast %cst_81 : f32 to vector<1x32xf32>
    %370 = arith.subf %369, %363 : vector<1x32xf32>
    %371 = arith.mulf %370, %368 : vector<1x32xf32>
    %372 = arith.mulf %363, %342 : vector<1x32xf32>
    %373 = arith.addf %371, %372 : vector<1x32xf32>
    %c10 = arith.constant 10 : index
    %c0_82 = arith.constant 0 : index
    %374 = vector.load %arg8[%c10, %c0_82] : memref<16x32xf32, #tpu.memory_space<vmem>>, vector<1x32xf32>
    tpu.vector_store %arg8[%c10, %c0_82], %373 {strides = array<i32>} : memref<16x32xf32, #tpu.memory_space<vmem>>, vector<1x32xf32>,
    %375 = vector.extract_strided_slice %31 {offsets = [11, 0], sizes = [1, 96], strides = [1, 1]} : vector<16x96xf32> to vector<1x96xf32>
    %376 = arith.truncf %373 : vector<1x32xf32> to vector<1x32xbf16>
    %cst_83 = arith.constant dense<0.000000e+00> : vector<1x96xf32>
    %377 = tpu.matmul %376, %32, %cst_83 {dimension_numbers = #tpu.dot_dimension_numbers<[1], [0], [0], [1], [0, 0, 1, 1], [], []>} : vector<1x32xbf16>, vector<32x96xbf16>, vector<1x96xf32> -> vector<1x96xf32>
    %378 = arith.addf %377, %2 : vector<1x96xf32>
    %379 = vector.extract_strided_slice %375 {offsets = [0, 0], sizes = [1, 32], strides = [1, 1]} : vector<1x96xf32> to vector<1x32xf32>
    %380 = vector.extract_strided_slice %378 {offsets = [0, 0], sizes = [1, 32], strides = [1, 1]} : vector<1x96xf32> to vector<1x32xf32>
    %381 = arith.addf %379, %380 : vector<1x32xf32>
    %382 = arith.negf %381 : vector<1x32xf32>
    %383 = math.exp %382 : vector<1x32xf32>
    %cst_84 = arith.constant 1.000000e+00 : f32
    %384 = vector.broadcast %cst_84 : f32 to vector<1x32xf32>
    %385 = arith.addf %384, %383 : vector<1x32xf32>
    %386 = arith.divf %384, %385 : vector<1x32xf32>
    %387 = vector.extract_strided_slice %375 {offsets = [0, 32], sizes = [1, 32], strides = [1, 1]} : vector<1x96xf32> to vector<1x32xf32>
    %388 = vector.extract_strided_slice %378 {offsets = [0, 32], sizes = [1, 32], strides = [1, 1]} : vector<1x96xf32> to vector<1x32xf32>
    %389 = arith.addf %387, %388 : vector<1x32xf32>
    %390 = arith.negf %389 : vector<1x32xf32>
    %391 = math.exp %390 : vector<1x32xf32>
    %cst_85 = arith.constant 1.000000e+00 : f32
    %392 = vector.broadcast %cst_85 : f32 to vector<1x32xf32>
    %393 = arith.addf %392, %391 : vector<1x32xf32>
    %394 = arith.divf %392, %393 : vector<1x32xf32>
    %395 = vector.extract_strided_slice %375 {offsets = [0, 64], sizes = [1, 32], strides = [1, 1]} : vector<1x96xf32> to vector<1x32xf32>
    %396 = vector.extract_strided_slice %378 {offsets = [0, 64], sizes = [1, 32], strides = [1, 1]} : vector<1x96xf32> to vector<1x32xf32>
    %397 = arith.mulf %386, %396 : vector<1x32xf32>
    %398 = arith.addf %395, %397 : vector<1x32xf32>
    %399 = math.tanh %398 : vector<1x32xf32>
    %cst_86 = arith.constant 1.000000e+00 : f32
    %400 = vector.broadcast %cst_86 : f32 to vector<1x32xf32>
    %401 = arith.subf %400, %394 : vector<1x32xf32>
    %402 = arith.mulf %401, %399 : vector<1x32xf32>
    %403 = arith.mulf %394, %373 : vector<1x32xf32>
    %404 = arith.addf %402, %403 : vector<1x32xf32>
    %c11 = arith.constant 11 : index
    %c0_87 = arith.constant 0 : index
    %405 = vector.load %arg8[%c11, %c0_87] : memref<16x32xf32, #tpu.memory_space<vmem>>, vector<1x32xf32>
    tpu.vector_store %arg8[%c11, %c0_87], %404 {strides = array<i32>} : memref<16x32xf32, #tpu.memory_space<vmem>>, vector<1x32xf32>,
    %406 = vector.extract_strided_slice %31 {offsets = [12, 0], sizes = [1, 96], strides = [1, 1]} : vector<16x96xf32> to vector<1x96xf32>
    %407 = arith.truncf %404 : vector<1x32xf32> to vector<1x32xbf16>
    %cst_88 = arith.constant dense<0.000000e+00> : vector<1x96xf32>
    %408 = tpu.matmul %407, %32, %cst_88 {dimension_numbers = #tpu.dot_dimension_numbers<[1], [0], [0], [1], [0, 0, 1, 1], [], []>} : vector<1x32xbf16>, vector<32x96xbf16>, vector<1x96xf32> -> vector<1x96xf32>
    %409 = arith.addf %408, %2 : vector<1x96xf32>
    %410 = vector.extract_strided_slice %406 {offsets = [0, 0], sizes = [1, 32], strides = [1, 1]} : vector<1x96xf32> to vector<1x32xf32>
    %411 = vector.extract_strided_slice %409 {offsets = [0, 0], sizes = [1, 32], strides = [1, 1]} : vector<1x96xf32> to vector<1x32xf32>
    %412 = arith.addf %410, %411 : vector<1x32xf32>
    %413 = arith.negf %412 : vector<1x32xf32>
    %414 = math.exp %413 : vector<1x32xf32>
    %cst_89 = arith.constant 1.000000e+00 : f32
    %415 = vector.broadcast %cst_89 : f32 to vector<1x32xf32>
    %416 = arith.addf %415, %414 : vector<1x32xf32>
    %417 = arith.divf %415, %416 : vector<1x32xf32>
    %418 = vector.extract_strided_slice %406 {offsets = [0, 32], sizes = [1, 32], strides = [1, 1]} : vector<1x96xf32> to vector<1x32xf32>
    %419 = vector.extract_strided_slice %409 {offsets = [0, 32], sizes = [1, 32], strides = [1, 1]} : vector<1x96xf32> to vector<1x32xf32>
    %420 = arith.addf %418, %419 : vector<1x32xf32>
    %421 = arith.negf %420 : vector<1x32xf32>
    %422 = math.exp %421 : vector<1x32xf32>
    %cst_90 = arith.constant 1.000000e+00 : f32
    %423 = vector.broadcast %cst_90 : f32 to vector<1x32xf32>
    %424 = arith.addf %423, %422 : vector<1x32xf32>
    %425 = arith.divf %423, %424 : vector<1x32xf32>
    %426 = vector.extract_strided_slice %406 {offsets = [0, 64], sizes = [1, 32], strides = [1, 1]} : vector<1x96xf32> to vector<1x32xf32>
    %427 = vector.extract_strided_slice %409 {offsets = [0, 64], sizes = [1, 32], strides = [1, 1]} : vector<1x96xf32> to vector<1x32xf32>
    %428 = arith.mulf %417, %427 : vector<1x32xf32>
    %429 = arith.addf %426, %428 : vector<1x32xf32>
    %430 = math.tanh %429 : vector<1x32xf32>
    %cst_91 = arith.constant 1.000000e+00 : f32
    %431 = vector.broadcast %cst_91 : f32 to vector<1x32xf32>
    %432 = arith.subf %431, %425 : vector<1x32xf32>
    %433 = arith.mulf %432, %430 : vector<1x32xf32>
    %434 = arith.mulf %425, %404 : vector<1x32xf32>
    %435 = arith.addf %433, %434 : vector<1x32xf32>
    %c12 = arith.constant 12 : index
    %c0_92 = arith.constant 0 : index
    %436 = vector.load %arg8[%c12, %c0_92] : memref<16x32xf32, #tpu.memory_space<vmem>>, vector<1x32xf32>
    tpu.vector_store %arg8[%c12, %c0_92], %435 {strides = array<i32>} : memref<16x32xf32, #tpu.memory_space<vmem>>, vector<1x32xf32>,
    %437 = vector.extract_strided_slice %31 {offsets = [13, 0], sizes = [1, 96], strides = [1, 1]} : vector<16x96xf32> to vector<1x96xf32>
    %438 = arith.truncf %435 : vector<1x32xf32> to vector<1x32xbf16>
    %cst_93 = arith.constant dense<0.000000e+00> : vector<1x96xf32>
    %439 = tpu.matmul %438, %32, %cst_93 {dimension_numbers = #tpu.dot_dimension_numbers<[1], [0], [0], [1], [0, 0, 1, 1], [], []>} : vector<1x32xbf16>, vector<32x96xbf16>, vector<1x96xf32> -> vector<1x96xf32>
    %440 = arith.addf %439, %2 : vector<1x96xf32>
    %441 = vector.extract_strided_slice %437 {offsets = [0, 0], sizes = [1, 32], strides = [1, 1]} : vector<1x96xf32> to vector<1x32xf32>
    %442 = vector.extract_strided_slice %440 {offsets = [0, 0], sizes = [1, 32], strides = [1, 1]} : vector<1x96xf32> to vector<1x32xf32>
    %443 = arith.addf %441, %442 : vector<1x32xf32>
    %444 = arith.negf %443 : vector<1x32xf32>
    %445 = math.exp %444 : vector<1x32xf32>
    %cst_94 = arith.constant 1.000000e+00 : f32
    %446 = vector.broadcast %cst_94 : f32 to vector<1x32xf32>
    %447 = arith.addf %446, %445 : vector<1x32xf32>
    %448 = arith.divf %446, %447 : vector<1x32xf32>
    %449 = vector.extract_strided_slice %437 {offsets = [0, 32], sizes = [1, 32], strides = [1, 1]} : vector<1x96xf32> to vector<1x32xf32>
    %450 = vector.extract_strided_slice %440 {offsets = [0, 32], sizes = [1, 32], strides = [1, 1]} : vector<1x96xf32> to vector<1x32xf32>
    %451 = arith.addf %449, %450 : vector<1x32xf32>
    %452 = arith.negf %451 : vector<1x32xf32>
    %453 = math.exp %452 : vector<1x32xf32>
    %cst_95 = arith.constant 1.000000e+00 : f32
    %454 = vector.broadcast %cst_95 : f32 to vector<1x32xf32>
    %455 = arith.addf %454, %453 : vector<1x32xf32>
    %456 = arith.divf %454, %455 : vector<1x32xf32>
    %457 = vector.extract_strided_slice %437 {offsets = [0, 64], sizes = [1, 32], strides = [1, 1]} : vector<1x96xf32> to vector<1x32xf32>
    %458 = vector.extract_strided_slice %440 {offsets = [0, 64], sizes = [1, 32], strides = [1, 1]} : vector<1x96xf32> to vector<1x32xf32>
    %459 = arith.mulf %448, %458 : vector<1x32xf32>
    %460 = arith.addf %457, %459 : vector<1x32xf32>
    %461 = math.tanh %460 : vector<1x32xf32>
    %cst_96 = arith.constant 1.000000e+00 : f32
    %462 = vector.broadcast %cst_96 : f32 to vector<1x32xf32>
    %463 = arith.subf %462, %456 : vector<1x32xf32>
    %464 = arith.mulf %463, %461 : vector<1x32xf32>
    %465 = arith.mulf %456, %435 : vector<1x32xf32>
    %466 = arith.addf %464, %465 : vector<1x32xf32>
    %c13 = arith.constant 13 : index
    %c0_97 = arith.constant 0 : index
    %467 = vector.load %arg8[%c13, %c0_97] : memref<16x32xf32, #tpu.memory_space<vmem>>, vector<1x32xf32>
    tpu.vector_store %arg8[%c13, %c0_97], %466 {strides = array<i32>} : memref<16x32xf32, #tpu.memory_space<vmem>>, vector<1x32xf32>,
    %468 = vector.extract_strided_slice %31 {offsets = [14, 0], sizes = [1, 96], strides = [1, 1]} : vector<16x96xf32> to vector<1x96xf32>
    %469 = arith.truncf %466 : vector<1x32xf32> to vector<1x32xbf16>
    %cst_98 = arith.constant dense<0.000000e+00> : vector<1x96xf32>
    %470 = tpu.matmul %469, %32, %cst_98 {dimension_numbers = #tpu.dot_dimension_numbers<[1], [0], [0], [1], [0, 0, 1, 1], [], []>} : vector<1x32xbf16>, vector<32x96xbf16>, vector<1x96xf32> -> vector<1x96xf32>
    %471 = arith.addf %470, %2 : vector<1x96xf32>
    %472 = vector.extract_strided_slice %468 {offsets = [0, 0], sizes = [1, 32], strides = [1, 1]} : vector<1x96xf32> to vector<1x32xf32>
    %473 = vector.extract_strided_slice %471 {offsets = [0, 0], sizes = [1, 32], strides = [1, 1]} : vector<1x96xf32> to vector<1x32xf32>
    %474 = arith.addf %472, %473 : vector<1x32xf32>
    %475 = arith.negf %474 : vector<1x32xf32>
    %476 = math.exp %475 : vector<1x32xf32>
    %cst_99 = arith.constant 1.000000e+00 : f32
    %477 = vector.broadcast %cst_99 : f32 to vector<1x32xf32>
    %478 = arith.addf %477, %476 : vector<1x32xf32>
    %479 = arith.divf %477, %478 : vector<1x32xf32>
    %480 = vector.extract_strided_slice %468 {offsets = [0, 32], sizes = [1, 32], strides = [1, 1]} : vector<1x96xf32> to vector<1x32xf32>
    %481 = vector.extract_strided_slice %471 {offsets = [0, 32], sizes = [1, 32], strides = [1, 1]} : vector<1x96xf32> to vector<1x32xf32>
    %482 = arith.addf %480, %481 : vector<1x32xf32>
    %483 = arith.negf %482 : vector<1x32xf32>
    %484 = math.exp %483 : vector<1x32xf32>
    %cst_100 = arith.constant 1.000000e+00 : f32
    %485 = vector.broadcast %cst_100 : f32 to vector<1x32xf32>
    %486 = arith.addf %485, %484 : vector<1x32xf32>
    %487 = arith.divf %485, %486 : vector<1x32xf32>
    %488 = vector.extract_strided_slice %468 {offsets = [0, 64], sizes = [1, 32], strides = [1, 1]} : vector<1x96xf32> to vector<1x32xf32>
    %489 = vector.extract_strided_slice %471 {offsets = [0, 64], sizes = [1, 32], strides = [1, 1]} : vector<1x96xf32> to vector<1x32xf32>
    %490 = arith.mulf %479, %489 : vector<1x32xf32>
    %491 = arith.addf %488, %490 : vector<1x32xf32>
    %492 = math.tanh %491 : vector<1x32xf32>
    %cst_101 = arith.constant 1.000000e+00 : f32
    %493 = vector.broadcast %cst_101 : f32 to vector<1x32xf32>
    %494 = arith.subf %493, %487 : vector<1x32xf32>
    %495 = arith.mulf %494, %492 : vector<1x32xf32>
    %496 = arith.mulf %487, %466 : vector<1x32xf32>
    %497 = arith.addf %495, %496 : vector<1x32xf32>
    %c14 = arith.constant 14 : index
    %c0_102 = arith.constant 0 : index
    %498 = vector.load %arg8[%c14, %c0_102] : memref<16x32xf32, #tpu.memory_space<vmem>>, vector<1x32xf32>
    tpu.vector_store %arg8[%c14, %c0_102], %497 {strides = array<i32>} : memref<16x32xf32, #tpu.memory_space<vmem>>, vector<1x32xf32>,
    %499 = vector.extract_strided_slice %31 {offsets = [15, 0], sizes = [1, 96], strides = [1, 1]} : vector<16x96xf32> to vector<1x96xf32>
    %500 = arith.truncf %497 : vector<1x32xf32> to vector<1x32xbf16>
    %cst_103 = arith.constant dense<0.000000e+00> : vector<1x96xf32>
    %501 = tpu.matmul %500, %32, %cst_103 {dimension_numbers = #tpu.dot_dimension_numbers<[1], [0], [0], [1], [0, 0, 1, 1], [], []>} : vector<1x32xbf16>, vector<32x96xbf16>, vector<1x96xf32> -> vector<1x96xf32>
    %502 = arith.addf %501, %2 : vector<1x96xf32>
    %503 = vector.extract_strided_slice %499 {offsets = [0, 0], sizes = [1, 32], strides = [1, 1]} : vector<1x96xf32> to vector<1x32xf32>
    %504 = vector.extract_strided_slice %502 {offsets = [0, 0], sizes = [1, 32], strides = [1, 1]} : vector<1x96xf32> to vector<1x32xf32>
    %505 = arith.addf %503, %504 : vector<1x32xf32>
    %506 = arith.negf %505 : vector<1x32xf32>
    %507 = math.exp %506 : vector<1x32xf32>
    %cst_104 = arith.constant 1.000000e+00 : f32
    %508 = vector.broadcast %cst_104 : f32 to vector<1x32xf32>
    %509 = arith.addf %508, %507 : vector<1x32xf32>
    %510 = arith.divf %508, %509 : vector<1x32xf32>
    %511 = vector.extract_strided_slice %499 {offsets = [0, 32], sizes = [1, 32], strides = [1, 1]} : vector<1x96xf32> to vector<1x32xf32>
    %512 = vector.extract_strided_slice %502 {offsets = [0, 32], sizes = [1, 32], strides = [1, 1]} : vector<1x96xf32> to vector<1x32xf32>
    %513 = arith.addf %511, %512 : vector<1x32xf32>
    %514 = arith.negf %513 : vector<1x32xf32>
    %515 = math.exp %514 : vector<1x32xf32>
    %cst_105 = arith.constant 1.000000e+00 : f32
    %516 = vector.broadcast %cst_105 : f32 to vector<1x32xf32>
    %517 = arith.addf %516, %515 : vector<1x32xf32>
    %518 = arith.divf %516, %517 : vector<1x32xf32>
    %519 = vector.extract_strided_slice %499 {offsets = [0, 64], sizes = [1, 32], strides = [1, 1]} : vector<1x96xf32> to vector<1x32xf32>
    %520 = vector.extract_strided_slice %502 {offsets = [0, 64], sizes = [1, 32], strides = [1, 1]} : vector<1x96xf32> to vector<1x32xf32>
    %521 = arith.mulf %510, %520 : vector<1x32xf32>
    %522 = arith.addf %519, %521 : vector<1x32xf32>
    %523 = math.tanh %522 : vector<1x32xf32>
    %cst_106 = arith.constant 1.000000e+00 : f32
    %524 = vector.broadcast %cst_106 : f32 to vector<1x32xf32>
    %525 = arith.subf %524, %518 : vector<1x32xf32>
    %526 = arith.mulf %525, %523 : vector<1x32xf32>
    %527 = arith.mulf %518, %497 : vector<1x32xf32>
    %528 = arith.addf %526, %527 : vector<1x32xf32>
    %c15 = arith.constant 15 : index
    %c0_107 = arith.constant 0 : index
    %529 = vector.load %arg8[%c15, %c0_107] : memref<16x32xf32, #tpu.memory_space<vmem>>, vector<1x32xf32>
    tpu.vector_store %arg8[%c15, %c0_107], %528 {strides = array<i32>} : memref<16x32xf32, #tpu.memory_space<vmem>>, vector<1x32xf32>,
    %c0_108 = arith.constant 0 : index
    %c0_109 = arith.constant 0 : index
    %530 = vector.load %arg8[%c0_108, %c0_109] : memref<16x32xf32, #tpu.memory_space<vmem>>, vector<16x32xf32>
    %531 = arith.truncf %27 : vector<1x32xf32> to vector<1x32xbf16>
    %c0_110 = arith.constant 0 : index
    %c0_111 = arith.constant 0 : index
    %532 = vector.load %arg4[%c0_110, %c0_111] : memref<32x36xbf16, #tpu.memory_space<vmem>>, vector<32x36xbf16>
    %cst_112 = arith.constant dense<0.000000e+00> : vector<1x36xf32>
    %533 = tpu.matmul %531, %532, %cst_112 {dimension_numbers = #tpu.dot_dimension_numbers<[1], [0], [0], [1], [0, 0, 1, 1], [], []>} : vector<1x32xbf16>, vector<32x36xbf16>, vector<1x36xf32> -> vector<1x36xf32>
    %534 = vector.extract_strided_slice %533 {offsets = [0, 0], sizes = [1, 32], strides = [1, 1]} : vector<1x36xf32> to vector<1x32xf32>
    %535 = arith.addf %534, %3 : vector<1x32xf32>
    %536 = vector.extract_strided_slice %533 {offsets = [0, 32], sizes = [1, 4], strides = [1, 1]} : vector<1x36xf32> to vector<1x4xf32>
    %537 = vector.broadcast %535 : vector<1x32xf32> to vector<16x32xf32>
    %538 = arith.mulf %530, %537 : vector<16x32xf32>
    %cst_113 = arith.constant dense<0.000000e+00> : vector<16xf32>
    %539 = vector.multi_reduction <add>, %538, %cst_113 [1] : vector<16x32xf32> to vector<16xf32>
    %540 = vector.shape_cast %539 : vector<16xf32> to vector<16x1xf32>
    %cst_114 = arith.constant dense<0xFF800000> : vector<1xf32>
    %541 = vector.multi_reduction <maximumf>, %540, %cst_114 [0] : vector<16x1xf32> to vector<1xf32>
    %542 = vector.shape_cast %541 : vector<1xf32> to vector<1x1xf32>
    %543 = vector.broadcast %542 : vector<1x1xf32> to vector<16x1xf32>
    %544 = arith.subf %540, %543 : vector<16x1xf32>
    %545 = math.exp %544 : vector<16x1xf32>
    %cst_115 = arith.constant dense<0.000000e+00> : vector<1xf32>
    %546 = vector.multi_reduction <add>, %545, %cst_115 [0] : vector<16x1xf32> to vector<1xf32>
    %547 = vector.shape_cast %546 : vector<1xf32> to vector<1x1xf32>
    %548 = tpu.reciprocal %547 {approx = true} : vector<1x1xf32> -> vector<1x1xf32>
    %549 = vector.broadcast %548 : vector<1x1xf32> to vector<16x1xf32>
    %550 = arith.mulf %545, %549 : vector<16x1xf32>
    %551 = vector.broadcast %550 : vector<16x1xf32> to vector<16x32xf32>
    %552 = arith.mulf %551, %530 : vector<16x32xf32>
    %cst_116 = arith.constant dense<0.000000e+00> : vector<32xf32>
    %553 = vector.multi_reduction <add>, %552, %cst_116 [0] : vector<16x32xf32> to vector<32xf32>
    %554 = vector.shape_cast %553 : vector<32xf32> to vector<1x32xf32>
    %555 = arith.truncf %554 : vector<1x32xf32> to vector<1x32xbf16>
    %c0_117 = arith.constant 0 : index
    %c0_118 = arith.constant 0 : index
    %556 = vector.load %arg5[%c0_117, %c0_118] : memref<32x4xbf16, #tpu.memory_space<vmem>>, vector<32x4xbf16>
    %cst_119 = arith.constant dense<0.000000e+00> : vector<1x4xf32>
    %557 = tpu.matmul %555, %556, %cst_119 {dimension_numbers = #tpu.dot_dimension_numbers<[1], [0], [0], [1], [0, 0, 1, 1], [], []>} : vector<1x32xbf16>, vector<32x4xbf16>, vector<1x4xf32> -> vector<1x4xf32>
    %558 = arith.addf %557, %536 : vector<1x4xf32>
    %559 = arith.addf %558, %4 : vector<1x4xf32>
    %cst_120 = arith.constant dense<0xFF800000> : vector<1xf32>
    %560 = vector.multi_reduction <maximumf>, %559, %cst_120 [1] : vector<1x4xf32> to vector<1xf32>
    %561 = vector.shape_cast %560 : vector<1xf32> to vector<1x1xf32>
    %562 = vector.broadcast %561 : vector<1x1xf32> to vector<1x4xf32>
    %563 = arith.subf %559, %562 : vector<1x4xf32>
    %564 = math.exp %563 : vector<1x4xf32>
    %cst_121 = arith.constant dense<0.000000e+00> : vector<1xf32>
    %565 = vector.multi_reduction <add>, %564, %cst_121 [1] : vector<1x4xf32> to vector<1xf32>
    %566 = vector.shape_cast %565 : vector<1xf32> to vector<1x1xf32>
    %567 = vector.broadcast %566 : vector<1x1xf32> to vector<1x4xf32>
    %568 = arith.divf %564, %567 : vector<1x4xf32>
    %c0_122 = arith.constant 0 : index
    %c0_123 = arith.constant 0 : index
    %569 = vector.load %arg7[%c0_122, %c0_123] : memref<1x4xf32, #tpu.memory_space<vmem>>, vector<1x4xf32>
    tpu.vector_store %arg7[%c0_122, %c0_123], %568 {strides = array<i32>} : memref<1x4xf32, #tpu.memory_space<vmem>>, vector<1x4xf32>,
    return
  }
}

</mosaic_0001>

<bundles_post_ra>
// kernel: cran_forward.1
= control target key start
LH: loop header
LB: loop body
LE: loop exit
PB: predicated region body
PF: predicated region fallthrough
CT: control target
= control target key end

     0   :  { %vm35_vm0 = vcmask 1043456   ;;  %s2153_s0 = inlined_call_operand.vmem [shape: f32[8,32], index: 0, kind: input, shape index: {}]   ;;  %s2154_s1 = inlined_call_operand.vmem [shape: bf16[96,32], index: 1, kind: input, shape index: {}]   ;;  %s2155_s2 = inlined_call_operand.vmem [shape: bf16[32,96], index: 2, kind: input, shape index: {}]   ;;  %s2156_s3 = inlined_call_operand.vmem [shape: bf16[32,96], index: 3, kind: input, shape index: {}]   ;;  %s2157_s4 = inlined_call_operand.vmem [shape: bf16[32,36], index: 4, kind: input, shape index: {}]   ;;  %s2158_s5 = inlined_call_operand.vmem [shape: bf16[32,4], index: 5, kind: input, shape index: {}]   ;;  %s2159_s6 = inlined_call_operand.vmem [shape: f32[8,96], index: 6, kind: input, shape index: {}]   ;;  %s2160_s7 = inlined_call_operand.hbm [shape: f32[1,4], index: 7, kind: output, shape index: {}]  }
   0x1   :  { %v1575_v0 = vld [vmem:[%s2154_s1 + $0x18] sm:$0xff]  ;;  %v1573_v1 = vld [vmem:[%s2154_s1 + $0x8] sm:$0xff]  ;;  %v1574_v3 = vld [vmem:[%s2154_s1 + $0x10] sm:$0xff] }
   0x2   :  { %v1577_v2 = vld [vmem:[%s2154_s1 + $0x28] sm:$0xff]  ;;  %75 = vmatpush.bf16.msra.mxu0 %v1575_v0  ;;  %103 = vmatpush.bf16.msra.mxu1 %v1573_v1  ;;  %v1572_v4 = vld [vmem:[%s2154_s1] sm:$0xff] }
   0x3   :  { %v33_v5 = vld [vmem:[%s2153_s0] sm:$0xff]  ;;  %v1579_v6 = vld [vmem:[%s2155_s2 + $0x8] sm:$0xff]  ;;  %138 = vmatpush.bf16.msra.mxu2 %v1577_v2 }
   0x4   :  { %v1576_v7 = vld [vmem:[%s2154_s1 + $0x20] sm:$0xff]  ;;  %v34_v8 = vpack.c.bf16 %v33_v5, %v33_v5  ;;  %v1796_v9 = vld [vmem:[%s2156_s3 + $0x8] sm:$0xff]  ;;  %186 = vmatpush.bf16.msra.mxu3 %v1579_v6 }
   0x5   :  { %v1578_v10 = vld [vmem:[%s2155_s2] sm:$0xff] }
   0x6   :  { %12 = vsyncpa [#allocation4], 0  ;;  %v38_v11 = vsel %vm35_vm0, %v34_v8, 0  ;;  %76 = vmatpush.bf16.msra.mxu0 %v1574_v3  ;;  %104 = vmatpush.bf16.msra.mxu1 %v1572_v4  ;;  %vm65_vm1 = vcmask 261120   ;;  %v1805_v15 = vld [vmem:[%s2156_s3] sm:$0xff]  ;;  %v1725_v18 = vmov 0  }
   0x7   :  { %v47_v12 = vshrl.u32 %v38_v11, 16  ;;  %v49_v13 = vshll.u32 %v38_v11, 16  ;;  %v116_v14 = vrot.slane %v38_v11, 1  ;;  %139 = vmatpush.bf16.msra.mxu2 %v1576_v7  ;;  %v1590_v24 = vld [vmem:[%s2159_s6] ss:$0 sm:$0xff]  ;;  %vm154_vm2 = vcmask 259072  }
   0x8   :  { %187 = vmatpush.bf16.msra.mxu3 %v1578_v10  ;;  %v1834_v31 = vld [vmem:[%s2159_s6 + $0x2] sm:$0x1]  ;;  %s1726_s23 = smov 64   ;;  %v1844_v41 = vld [vmem:[%s2159_s6 + $0x1] ss:$0 sm:$0xff]  ;;  %s1727_s26 = smov 96  }
   0x9   :  { %v51_v16 = vrot.slane %v49_v13, 1  ;;  %1496 = vmatmul.msk.bf16.vlgmr.msra.gmra.mxu1 %vm65_vm1, %v38_v11  ;;  %s1470_s19 = sshll.u32 %s2160_s7, 4  ;;  %s1471_s19 = int_to_ptr.hbm [resolvable:$true] %s1470_s19 }
   0xa   :  { %218 = vmatpush.bf16.msrb.mxu0 %v1796_v9  ;;  %283 = vmatpush.bf16.msrb.mxu1 %v1796_v9 }
   0xb   :  { %354 = vmatpush.bf16.msrb.mxu2 %v1796_v9  ;;  %v52_v17 = vor.u32 %v51_v16, %v47_v12  ;;  %1514 = vmatmul.msk.bf16.vlgmr.msra.gmra.mxu3 %vm65_vm1, %v38_v11 }
   0xc   :  { %1505 = vmatmul.msk.bf16.vlgmr.msra.gmra.mxu2 %vm65_vm1, %v116_v14  ;;  %424 = vmatpush.bf16.msrb.mxu3 %v1796_v9 }
   0xd   :  { %1487 = vmatmul.msk.bf16.vlgmr.msra.gmra.mxu0 %vm65_vm1, %v52_v17 }
   0xe   :  { %219 = vmatpush.bf16.msrb.mxu0 %v1805_v15  ;;  %284 = vmatpush.bf16.msrb.mxu1 %v1805_v15 }
   0xf   :  { %355 = vmatpush.bf16.msrb.mxu2 %v1805_v15 }
  0x10   :  { %425 = vmatpush.bf16.msrb.mxu3 %v1805_v15 }
  0x12   :  { %496 = vmatpush.bf16.msra.mxu0 %v1796_v9  ;;  %566 = vmatpush.bf16.msra.mxu1 %v1796_v9 }
  0x13   :  { %638 = vmatpush.bf16.msra.mxu2 %v1796_v9 }
  0x14   :  { %708 = vmatpush.bf16.msra.mxu3 %v1796_v9 }
  0x16   :  { %497 = vmatpush.bf16.msra.mxu0 %v1805_v15  ;;  %567 = vmatpush.bf16.msra.mxu1 %v1805_v15 }
  0x17   :  { %639 = vmatpush.bf16.msra.mxu2 %v1805_v15 }
  0x18   :  { %709 = vmatpush.bf16.msra.mxu3 %v1805_v15 }
  0x1d   :  { %220 = vmatmul.bf16.vlgmr.msrb.gmra.mxu0 %v1725_v18 }
  0x1e   :  { %780 = vmatpush.bf16.msrb.mxu0 %v1796_v9 }
  0x22   :  { %781 = vmatpush.bf16.msrb.mxu0 %v1805_v15 }
  0x86   :  { %v106_v19 = vpop.f32.mrf.mxu1 }
  0x8a   :  { %v78_v20 = vpop.f32.mrf.mxu0 }
  0x8b   :  { %v107_v21 = vadd.f32 %v106_v19, %v78_v20 }
  0x8e   :  { %v108_v26 = vpop.f32.mrf.mxu1  ;;  %v189_v42 = vpop.f32.mrf.mxu3 }
  0x8f   :  { %v141_v22 = vpop.f32.mrf.mxu2  ;;  %v1847_v43 = vadd.f32 %v1844_v41, %v189_v42 }
  0x90   :  { %v146_v23 = vadd.f32 %v141_v22, %v107_v21 }
  0x92   :  { %v80_v25 = vpop.f32.mrf.mxu0  ;;  %v149_v27 = vadd.f32 %v1590_v24, %v146_v23 }
  0x93   :  { %v109_v28 = vadd.f32 %v108_v26, %v80_v25 }
  0x94   :  { %v151_v32 = vmax.f32 %v149_v27, 0.0 }
  0x96   :  { %v153_v37 = vsel %vm65_vm1, %v151_v32, -inf }
  0x97   :  { %v143_v29 = vpop.f32.mrf.mxu2 }
  0x98   :  { %v147_v30 = vadd.f32 %v143_v29, %v109_v28 }
  0x9a   :  { %v150_v33 = vadd.f32 %v1590_v24, %v147_v30  ;;  %v221_v34 = vpop.f32.mrf.mxu0 }
  0x9b   :  { %v222_v36 = vadd.f32 %v221_v34, %v1834_v31 }
  0x9c   :  { %v152_v35 = vmax.f32 %v150_v33, 0.0 }
  0x9d   :  { %246 = vrot.lane.b32.xlu0 %v222_v36, %s1726_s23  ;;  %v225_v44 = vadd.f32 %v222_v36, %v1847_v43 }
  0x9e   :  { %v155_v38 = vsel %vm154_vm2, %v152_v35, -inf }
  0x9f   :  { %v1839_v39 = vmax.f32 %v153_v37, %v155_v38  ;;  %v1523_v45 = vmul.f32 -1.442695, %v225_v44 }
  0xa1   :  { %1592 = vpow2.f32 %v1523_v45 }
  0xa2   :  { %v223_v40 = vpop.f32.mrf.mxu0 }
  0xa7   :  { %v1593_v46 = vpop.eup %1592 }
  0xa8   :  { %v229_v47 = vadd.f32 1.0, %v1593_v46 }
  0xaa   :  { %1594 = vrcp.f32 %v229_v47  ;;  %v241_v53 = vand.u32 2147483648, %v229_v47  ;;  %vm235_vm4 = vweird.f32 %v229_v47  ;;  %v239_v54 = vand.u32 2147483647, %v229_v47 }
  0xac   :  { %v242_v56 = vor.u32 1.1754944e-38, %v241_v53  ;;  %vm240_vm6 = vcmp.eq.f32.partialorder %v239_v54, 8.507059e+37 }
  0xb0   :  { %v1595_v48 = vpop.eup %1594 }
  0xb1   :  { %v231_v49 = vmul.f32 %v1595_v48, %v229_v47  ;;  %vm236_vm3 = vweird.f32 %v1595_v48 }
  0xb2   :  { %vm237_vm5 = vmor %vm235_vm4, %vm236_vm3 }
  0xb3   :  { %v232_v50 = vsub.f32 1.0, %v231_v49 }
  0xb5   :  { %v233_v51 = vmul.f32 %v1595_v48, %v232_v50 }
  0xb7   :  { %v234_v52 = vadd.f32 %v1595_v48, %v233_v51 }
  0xb9   :  { %v238_v55 = vsel %vm237_vm5, %v1595_v48, %v234_v52 }
  0xba   :  { %v243_v58 = vsel %vm240_vm6, %v242_v56, %v238_v55 }
  0xbb   :  { %v256_v63 = vsub.f32 1.0, %v243_v58  ;;  %v262_v1 = vmul.f32 0.0, %v243_v58 }
 0x10f   :  { %v247_v57 = vpop.permute.xlu0 %246 }
 0x110   :  { %v249_v59 = vmul.f32 %v247_v57, %v243_v58 }
 0x112   :  { %251 = vrot.lane.b32.xlu0 %v249_v59, %s1726_s23 }
 0x184   :  { %v252_v60 = vpop.permute.xlu0 %251 }
 0x185   :  { %v254_v61 = vadd.f32 %v252_v60, %v1847_v43 }
 0x187   :  { %1596 = vtanh.f32 %v254_v61 }
 0x18d   :  { %v1597_v62 = vpop.eup %1596 }
 0x18e   :  { %258 = vrot.lane.b32.xlu1 %v1597_v62, %s1727_s26 }
 0x200   :  { %v259_v0 = vpop.permute.xlu1 %258 }
 0x201   :  { %v261_v2 = vmul.f32 %v259_v0, %v256_v63 }
 0x203   :  { %v1853_v3 = vadd.f32 %v262_v1, %v261_v2 }
 0x205   :  { %v270_v4 = vpack.c.bf16 %v1853_v3, %v1853_v3  ;;  %v329_v33 = vrot.slane %v1853_v3, 7 }
 0x207   :  { %272 = vrot.lane.b32.xlu1 %v270_v4, %s1727_s26 }
 0x279   :  { %v273_v5 = vpop.permute.xlu1 %272 }
 0x27a   :  { %1524 = vmatmul.msk.bf16.vlgmr.msrb.gmra.mxu1 %vm65_vm1, %v273_v5 }
 0x27b   :  { %846 = vmatpush.bf16.msrb.mxu1 %v1796_v9 }
 0x27f   :  { %847 = vmatpush.bf16.msrb.mxu1 %v1805_v15 }
 0x2f7   :  { %v286_v6 = vpop.f32.mrf.mxu1 }
 0x2f8   :  { %v287_v7 = vadd.f32 %v286_v6, %v1834_v31 }
 0x2fa   :  { %v291_v8 = vrot.slane %v287_v7, 7 }
 0x2fc   :  { %313 = vrot.lane.b32.xlu2 %v291_v8, %s1726_s23  ;;  %v293_v11 = vadd.f32 %v291_v8, %v1847_v43 }
 0x2fe   :  { %v1525_v12 = vmul.f32 -1.442695, %v293_v11 }
 0x2ff   :  { %v288_v10 = vpop.f32.mrf.mxu1 }
 0x300   :  { %1598 = vpow2.f32 %v1525_v12 }
 0x306   :  { %v1599_v13 = vpop.eup %1598 }
 0x307   :  { %v297_v14 = vadd.f32 1.0, %v1599_v13 }
 0x309   :  { %1600 = vrcp.f32 %v297_v14  ;;  %v309_v21 = vand.u32 2147483648, %v297_v14  ;;  %vm303_vm8 = vweird.f32 %v297_v14  ;;  %v307_v22 = vand.u32 2147483647, %v297_v14 }
 0x30b   :  { %v310_v24 = vor.u32 1.1754944e-38, %v309_v21  ;;  %vm308_vm10 = vcmp.eq.f32.partialorder %v307_v22, 8.507059e+37 }
 0x30f   :  { %v1601_v16 = vpop.eup %1600 }
 0x310   :  { %v299_v17 = vmul.f32 %v1601_v16, %v297_v14  ;;  %vm304_vm7 = vweird.f32 %v1601_v16  ;;  %v1891_v14 = vpop.f32.mrf.mxu3 }
 0x311   :  { %vm305_vm9 = vmor %vm303_vm8, %vm304_vm7 }
 0x312   :  { %v300_v18 = vsub.f32 1.0, %v299_v17 }
 0x314   :  { %v301_v19 = vmul.f32 %v1601_v16, %v300_v18 }
 0x316   :  { %v302_v20 = vadd.f32 %v1601_v16, %v301_v19 }
 0x318   :  { %v306_v23 = vsel %vm305_vm9, %v1601_v16, %v302_v20 }
 0x319   :  { %v311_v26 = vsel %vm308_vm10, %v310_v24, %v306_v23 }
 0x31a   :  { %v323_v32 = vsub.f32 1.0, %v311_v26  ;;  %v331_v35 = vmul.f32 %v329_v33, %v311_v26 }
 0x356   :  { %v314_v25 = vpop.permute.xlu2 %313 }
 0x357   :  { %v316_v27 = vmul.f32 %v314_v25, %v311_v26 }
 0x359   :  { %318 = vrot.lane.b32.xlu2 %v316_v27, %s1726_s23 }
 0x3b3   :  { %v319_v28 = vpop.permute.xlu2 %318 }
 0x3b4   :  { %v321_v29 = vadd.f32 %v319_v28, %v1847_v43 }
 0x3b6   :  { %1602 = vtanh.f32 %v321_v29 }
 0x3bc   :  { %v1603_v30 = vpop.eup %1602 }
 0x3bd   :  { %325 = vrot.lane.b32.xlu0 %v1603_v30, %s1727_s26 }
 0x42f   :  { %v326_v34 = vpop.permute.xlu0 %325 }
 0x430   :  { %v328_v36 = vmul.f32 %v326_v34, %v323_v32 }
 0x432   :  { %v1868_v37 = vadd.f32 %v331_v35, %v328_v36 }
 0x434   :  { %v339_v38 = vpack.c.bf16 %v1868_v37, %v1868_v37  ;;  %v400_v5 = vrot.slane %v1868_v37, 7 }
 0x436   :  { %v341_v40 = vshrl.u32 %v339_v38, 16 }
 0x438   :  { %343 = vrot.lane.b32.xlu1 %v341_v40, %s1727_s26 }
 0x4aa   :  { %v344_v42 = vpop.permute.xlu1 %343 }
 0x4ab   :  { %1526 = vmatmul.msk.bf16.vlgmr.msrb.gmra.mxu2 %vm65_vm1, %v344_v42 }
 0x4ac   :  { %916 = vmatpush.bf16.msrb.mxu2 %v1796_v9 }
 0x4b0   :  { %917 = vmatpush.bf16.msrb.mxu2 %v1805_v15 }
 0x52e   :  { %v357_v44 = vpop.f32.mrf.mxu2 }
 0x52f   :  { %v358_v45 = vadd.f32 %v357_v44, %v1834_v31 }
 0x531   :  { %v362_v46 = vrot.slane %v358_v45, 6 }
 0x533   :  { %384 = vrot.lane.b32.xlu2 %v362_v46, %s1726_s23  ;;  %v364_v48 = vadd.f32 %v362_v46, %v1847_v43 }
 0x535   :  { %v1527_v49 = vmul.f32 -1.442695, %v364_v48 }
 0x536   :  { %v359_v47 = vpop.f32.mrf.mxu2 }
 0x537   :  { %1604 = vpow2.f32 %v1527_v49 }
 0x53d   :  { %v1605_v50 = vpop.eup %1604 }
 0x53e   :  { %v368_v51 = vadd.f32 1.0, %v1605_v50 }
 0x540   :  { %1606 = vrcp.f32 %v368_v51  ;;  %v380_v57 = vand.u32 2147483648, %v368_v51  ;;  %vm374_vm12 = vweird.f32 %v368_v51  ;;  %v378_v58 = vand.u32 2147483647, %v368_v51 }
 0x542   :  { %v381_v60 = vor.u32 1.1754944e-38, %v380_v57  ;;  %vm379_vm14 = vcmp.eq.f32.partialorder %v378_v58, 8.507059e+37 }
 0x546   :  { %v1607_v52 = vpop.eup %1606 }
 0x547   :  { %v370_v53 = vmul.f32 %v1607_v52, %v368_v51  ;;  %vm375_vm11 = vweird.f32 %v1607_v52 }
 0x548   :  { %vm376_vm13 = vmor %vm374_vm12, %vm375_vm11 }
 0x549   :  { %v371_v54 = vsub.f32 1.0, %v370_v53 }
 0x54b   :  { %v372_v55 = vmul.f32 %v1607_v52, %v371_v54 }
 0x54d   :  { %v373_v56 = vadd.f32 %v1607_v52, %v372_v55 }
 0x54f   :  { %v377_v59 = vsel %vm376_vm13, %v1607_v52, %v373_v56 }
 0x550   :  { %v382_v62 = vsel %vm379_vm14, %v381_v60, %v377_v59 }
 0x551   :  { %v394_v4 = vsub.f32 1.0, %v382_v62  ;;  %v402_v7 = vmul.f32 %v400_v5, %v382_v62 }
 0x58d   :  { %v385_v61 = vpop.permute.xlu2 %384 }
 0x58e   :  { %v387_v63 = vmul.f32 %v385_v61, %v382_v62 }
 0x590   :  { %389 = vrot.lane.b32.xlu0 %v387_v63, %s1726_s23 }
 0x602   :  { %v390_v0 = vpop.permute.xlu0 %389 }
 0x603   :  { %v392_v1 = vadd.f32 %v390_v0, %v1847_v43 }
 0x605   :  { %1608 = vtanh.f32 %v392_v1 }
 0x60b   :  { %v1609_v2 = vpop.eup %1608 }
 0x60c   :  { %396 = vrot.lane.b32.xlu1 %v1609_v2, %s1727_s26 }
 0x67e   :  { %v397_v6 = vpop.permute.xlu1 %396 }
 0x67f   :  { %v399_v8 = vmul.f32 %v397_v6, %v394_v4 }
 0x681   :  { %v1883_v10 = vadd.f32 %v402_v7, %v399_v8 }
 0x683   :  { %v410_v11 = vpack.c.bf16 %v1883_v10, %v1883_v10  ;;  %v470_v45 = vrot.slane %v1883_v10, 7 }
 0x685   :  { %v412_v12 = vrot.slane %v410_v11, 1 }
 0x687   :  { %413 = vrot.lane.b32.xlu2 %v412_v12, %s1727_s26 }
 0x6e1   :  { %v414_v13 = vpop.permute.xlu2 %413 }
 0x6e2   :  { %1528 = vmatmul.msk.bf16.vlgmr.msrb.gmra.mxu3 %vm65_vm1, %v414_v13 }
 0x6e3   :  { %985 = vmatpush.bf16.msrb.mxu3 %v1796_v9 }
 0x6e7   :  { %986 = vmatpush.bf16.msrb.mxu3 %v1805_v15 }
 0x765   :  { %v427_v16 = vpop.f32.mrf.mxu3 }
 0x766   :  { %v428_v17 = vadd.f32 %v427_v16, %v1834_v31 }
 0x768   :  { %v432_v18 = vrot.slane %v428_v17, 5 }
 0x76a   :  { %454 = vrot.lane.b32.xlu0 %v432_v18, %s1726_s23  ;;  %v434_v20 = vadd.f32 %v432_v18, %v1847_v43 }
 0x76c   :  { %v1529_v21 = vmul.f32 -1.442695, %v434_v20 }
 0x76d   :  { %v429_v19 = vpop.f32.mrf.mxu3 }
 0x76e   :  { %1610 = vpow2.f32 %v1529_v21 }
 0x774   :  { %v1611_v22 = vpop.eup %1610 }
 0x775   :  { %v438_v23 = vadd.f32 1.0, %v1611_v22 }
 0x777   :  { %1612 = vrcp.f32 %v438_v23  ;;  %v450_v29 = vand.u32 2147483648, %v438_v23  ;;  %vm444_vm0 = vweird.f32 %v438_v23  ;;  %v448_v30 = vand.u32 2147483647, %v438_v23 }
 0x779   :  { %v451_v33 = vor.u32 1.1754944e-38, %v450_v29  ;;  %vm449_vm3 = vcmp.eq.f32.partialorder %v448_v30, 8.507059e+37 }
 0x77d   :  { %v1613_v24 = vpop.eup %1612 }
 0x77e   :  { %v440_v25 = vmul.f32 %v1613_v24, %v438_v23  ;;  %vm445_vm15 = vweird.f32 %v1613_v24 }
 0x77f   :  { %vm446_vm2 = vmor %vm444_vm0, %vm445_vm15 }
 0x780   :  { %v441_v26 = vsub.f32 1.0, %v440_v25 }
 0x782   :  { %v442_v27 = vmul.f32 %v1613_v24, %v441_v26 }
 0x784   :  { %v443_v28 = vadd.f32 %v1613_v24, %v442_v27 }
 0x786   :  { %v447_v32 = vsel %vm446_vm2, %v1613_v24, %v443_v28 }
 0x787   :  { %v452_v35 = vsel %vm449_vm3, %v451_v33, %v447_v32 }
 0x788   :  { %v464_v44 = vsub.f32 1.0, %v452_v35  ;;  %v472_v47 = vmul.f32 %v470_v45, %v452_v35 }
 0x7dc   :  { %v455_v34 = vpop.permute.xlu0 %454 }
 0x7dd   :  { %v457_v36 = vmul.f32 %v455_v34, %v452_v35 }
 0x7df   :  { %459 = vrot.lane.b32.xlu1 %v457_v36, %s1726_s23 }
 0x851   :  { %v460_v38 = vpop.permute.xlu1 %459 }
 0x852   :  { %v462_v40 = vadd.f32 %v460_v38, %v1847_v43 }
 0x854   :  { %1614 = vtanh.f32 %v462_v40 }
 0x85a   :  { %v1615_v42 = vpop.eup %1614 }
 0x85b   :  { %466 = vrot.lane.b32.xlu2 %v1615_v42, %s1727_s26 }
 0x8b5   :  { %v467_v46 = vpop.permute.xlu2 %466 }
 0x8b6   :  { %v469_v48 = vmul.f32 %v467_v46, %v464_v44 }
 0x8b8   :  { %v1900_v49 = vadd.f32 %v472_v47, %v469_v48 }
 0x8ba   :  { %v480_v50 = vpack.c.bf16 %v1900_v49, %v1900_v49  ;;  %v542_v19 = vrot.slane %v1900_v49, 7 }
 0x8bc   :  { %v482_v51 = vshrl.u32 %v480_v50, 16 }
 0x8be   :  { %v484_v52 = vrot.slane %v482_v51, 1 }
 0x8c0   :  { %485 = vrot.lane.b32.xlu0 %v484_v52, %s1727_s26 }
 0x932   :  { %v486_v53 = vpop.permute.xlu0 %485 }
 0x933   :  { %1530 = vmatmul.msk.bf16.vlgmr.msra.gmra.mxu0 %vm65_vm1, %v486_v53 }
 0x934   :  { %1056 = vmatpush.bf16.msra.mxu0 %v1796_v9 }
 0x938   :  { %1057 = vmatpush.bf16.msra.mxu0 %v1805_v15 }
 0x9b0   :  { %v499_v54 = vpop.f32.mrf.mxu0 }
 0x9b1   :  { %v500_v55 = vadd.f32 %v499_v54, %v1834_v31 }
 0x9b3   :  { %v504_v56 = vrot.slane %v500_v55, 4 }
 0x9b5   :  { %526 = vrot.lane.b32.xlu1 %v504_v56, %s1726_s23  ;;  %v506_v58 = vadd.f32 %v504_v56, %v1847_v43 }
 0x9b7   :  { %v1531_v59 = vmul.f32 -1.442695, %v506_v58 }
 0x9b8   :  { %v501_v57 = vpop.f32.mrf.mxu0 }
 0x9b9   :  { %1616 = vpow2.f32 %v1531_v59 }
 0x9bf   :  { %v1617_v60 = vpop.eup %1616 }
 0x9c0   :  { %v510_v61 = vadd.f32 1.0, %v1617_v60 }
 0x9c2   :  { %1618 = vrcp.f32 %v510_v61  ;;  %v522_v4 = vand.u32 2147483648, %v510_v61  ;;  %vm516_vm5 = vweird.f32 %v510_v61  ;;  %v520_v5 = vand.u32 2147483647, %v510_v61 }
 0x9c4   :  { %v523_v7 = vor.u32 1.1754944e-38, %v522_v4  ;;  %vm521_vm7 = vcmp.eq.f32.partialorder %v520_v5, 8.507059e+37 }
 0x9c8   :  { %v1619_v62 = vpop.eup %1618 }
 0x9c9   :  { %v512_v63 = vmul.f32 %v1619_v62, %v510_v61  ;;  %vm517_vm4 = vweird.f32 %v1619_v62 }
 0x9ca   :  { %vm518_vm6 = vmor %vm516_vm5, %vm517_vm4 }
 0x9cb   :  { %v513_v0 = vsub.f32 1.0, %v512_v63 }
 0x9cd   :  { %v514_v1 = vmul.f32 %v1619_v62, %v513_v0 }
 0x9cf   :  { %v515_v2 = vadd.f32 %v1619_v62, %v514_v1 }
 0x9d1   :  { %v519_v6 = vsel %vm518_vm6, %v1619_v62, %v515_v2 }
 0x9d2   :  { %v524_v11 = vsel %vm521_vm7, %v523_v7, %v519_v6 }
 0x9d3   :  { %v536_v18 = vsub.f32 1.0, %v524_v11  ;;  %v544_v21 = vmul.f32 %v542_v19, %v524_v11 }
 0xa27   :  { %v527_v8 = vpop.permute.xlu1 %526 }
 0xa28   :  { %v529_v12 = vmul.f32 %v527_v8, %v524_v11 }
 0xa2a   :  { %531 = vrot.lane.b32.xlu2 %v529_v12, %s1726_s23 }
 0xa84   :  { %v532_v13 = vpop.permute.xlu2 %531 }
 0xa85   :  { %v534_v16 = vadd.f32 %v532_v13, %v1847_v43 }
 0xa87   :  { %1620 = vtanh.f32 %v534_v16 }
 0xa8d   :  { %v1621_v17 = vpop.eup %1620 }
 0xa8e   :  { %538 = vrot.lane.b32.xlu0 %v1621_v17, %s1727_s26 }
 0xb00   :  { %v539_v20 = vpop.permute.xlu0 %538 }
 0xb01   :  { %v541_v22 = vmul.f32 %v539_v20, %v536_v18 }
 0xb03   :  { %v1915_v23 = vadd.f32 %v544_v21, %v541_v22 }
 0xb05   :  { %v552_v24 = vpack.c.bf16 %v1915_v23, %v1915_v23  ;;  %v612_v57 = vrot.slane %v1915_v23, 7 }
 0xb07   :  { %v554_v25 = vrot.slane %v552_v24, 2 }
 0xb09   :  { %555 = vrot.lane.b32.xlu1 %v554_v25, %s1727_s26 }
 0xb7b   :  { %v556_v26 = vpop.permute.xlu1 %555 }
 0xb7c   :  { %1532 = vmatmul.msk.bf16.vlgmr.msra.gmra.mxu1 %vm65_vm1, %v556_v26 }
 0xb7d   :  { %1125 = vmatpush.bf16.msra.mxu1 %v1796_v9 }
 0xb81   :  { %1126 = vmatpush.bf16.msra.mxu1 %v1805_v15 }
 0xbf9   :  { %v569_v27 = vpop.f32.mrf.mxu1 }
 0xbfa   :  { %v570_v28 = vadd.f32 %v569_v27, %v1834_v31 }
 0xbfc   :  { %v574_v29 = vrot.slane %v570_v28, 3 }
 0xbfe   :  { %596 = vrot.lane.b32.xlu2 %v574_v29, %s1726_s23  ;;  %v576_v32 = vadd.f32 %v574_v29, %v1847_v43 }
 0xc00   :  { %v1533_v33 = vmul.f32 -1.442695, %v576_v32 }
 0xc01   :  { %v571_v30 = vpop.f32.mrf.mxu1 }
 0xc02   :  { %1622 = vpow2.f32 %v1533_v33 }
 0xc08   :  { %v1623_v34 = vpop.eup %1622 }
 0xc09   :  { %v580_v35 = vadd.f32 1.0, %v1623_v34 }
 0xc0b   :  { %1624 = vrcp.f32 %v580_v35  ;;  %v592_v45 = vand.u32 2147483648, %v580_v35  ;;  %vm586_vm9 = vweird.f32 %v580_v35  ;;  %v590_v46 = vand.u32 2147483647, %v580_v35 }
 0xc0d   :  { %v593_v48 = vor.u32 1.1754944e-38, %v592_v45  ;;  %vm591_vm11 = vcmp.eq.f32.partialorder %v590_v46, 8.507059e+37 }
 0xc11   :  { %v1625_v36 = vpop.eup %1624 }
 0xc12   :  { %v582_v38 = vmul.f32 %v1625_v36, %v580_v35  ;;  %vm587_vm8 = vweird.f32 %v1625_v36 }
 0xc13   :  { %vm588_vm10 = vmor %vm586_vm9, %vm587_vm8 }
 0xc14   :  { %v583_v40 = vsub.f32 1.0, %v582_v38 }
 0xc16   :  { %v584_v42 = vmul.f32 %v1625_v36, %v583_v40 }
 0xc18   :  { %v585_v44 = vadd.f32 %v1625_v36, %v584_v42 }
 0xc1a   :  { %v589_v47 = vsel %vm588_vm10, %v1625_v36, %v585_v44 }
 0xc1b   :  { %v594_v51 = vsel %vm591_vm11, %v593_v48, %v589_v47 }
 0xc1c   :  { %v606_v56 = vsub.f32 1.0, %v594_v51  ;;  %v614_v59 = vmul.f32 %v612_v57, %v594_v51 }
 0xc58   :  { %v597_v50 = vpop.permute.xlu2 %596 }
 0xc59   :  { %v599_v52 = vmul.f32 %v597_v50, %v594_v51 }
 0xc5b   :  { %601 = vrot.lane.b32.xlu0 %v599_v52, %s1726_s23 }
 0xccd   :  { %v602_v53 = vpop.permute.xlu0 %601 }
 0xcce   :  { %v604_v54 = vadd.f32 %v602_v53, %v1847_v43 }
 0xcd0   :  { %1626 = vtanh.f32 %v604_v54 }
 0xcd6   :  { %v1627_v55 = vpop.eup %1626 }
 0xcd7   :  { %608 = vrot.lane.b32.xlu1 %v1627_v55, %s1727_s26 }
 0xd49   :  { %v609_v58 = vpop.permute.xlu1 %608 }
 0xd4a   :  { %v611_v60 = vmul.f32 %v609_v58, %v606_v56 }
 0xd4c   :  { %v1930_v61 = vadd.f32 %v614_v59, %v611_v60 }
 0xd4e   :  { %v622_v62 = vpack.c.bf16 %v1930_v61, %v1930_v61  ;;  %v684_v33 = vrot.slane %v1930_v61, 7 }
 0xd50   :  { %v624_v63 = vshrl.u32 %v622_v62, 16 }
 0xd52   :  { %v626_v0 = vrot.slane %v624_v63, 2 }
 0xd54   :  { %627 = vrot.lane.b32.xlu2 %v626_v0, %s1727_s26 }
 0xdae   :  { %v628_v1 = vpop.permute.xlu2 %627 }
 0xdaf   :  { %1534 = vmatmul.msk.bf16.vlgmr.msra.gmra.mxu2 %vm65_vm1, %v628_v1 }
 0xdb0   :  { %1196 = vmatpush.bf16.msra.mxu2 %v1796_v9 }
 0xdb4   :  { %1197 = vmatpush.bf16.msra.mxu2 %v1805_v15 }
 0xe32   :  { %v641_v2 = vpop.f32.mrf.mxu2 }
 0xe33   :  { %v642_v4 = vadd.f32 %v641_v2, %v1834_v31 }
 0xe35   :  { %v646_v5 = vrot.slane %v642_v4, 2 }
 0xe37   :  { %668 = vrot.lane.b32.xlu0 %v646_v5, %s1726_s23  ;;  %v648_v7 = vadd.f32 %v646_v5, %v1847_v43 }
 0xe39   :  { %v1535_v8 = vmul.f32 -1.442695, %v648_v7 }
 0xe3a   :  { %v643_v6 = vpop.f32.mrf.mxu2 }
 0xe3b   :  { %1628 = vpow2.f32 %v1535_v8 }
 0xe41   :  { %v1629_v11 = vpop.eup %1628 }
 0xe42   :  { %v652_v12 = vadd.f32 1.0, %v1629_v11 }
 0xe44   :  { %1630 = vrcp.f32 %v652_v12  ;;  %v664_v20 = vand.u32 2147483648, %v652_v12  ;;  %vm658_vm13 = vweird.f32 %v652_v12  ;;  %v662_v21 = vand.u32 2147483647, %v652_v12 }
 0xe46   :  { %v665_v24 = vor.u32 1.1754944e-38, %v664_v20  ;;  %vm663_vm15 = vcmp.eq.f32.partialorder %v662_v21, 8.507059e+37  ;;  %v1970_v21 = vadd.f32 %v1844_v41, %v1891_v14 }
 0xe4a   :  { %v1631_v13 = vpop.eup %1630 }
 0xe4b   :  { %v654_v16 = vmul.f32 %v1631_v13, %v652_v12  ;;  %vm659_vm12 = vweird.f32 %v1631_v13 }
 0xe4c   :  { %vm660_vm14 = vmor %vm658_vm13, %vm659_vm12 }
 0xe4d   :  { %v655_v17 = vsub.f32 1.0, %v654_v16 }
 0xe4f   :  { %v656_v18 = vmul.f32 %v1631_v13, %v655_v17 }
 0xe51   :  { %v657_v19 = vadd.f32 %v1631_v13, %v656_v18 }
 0xe53   :  { %v661_v22 = vsel %vm660_vm14, %v1631_v13, %v657_v19 }
 0xe54   :  { %v666_v26 = vsel %vm663_vm15, %v665_v24, %v661_v22 }
 0xe55   :  { %v678_v32 = vsub.f32 1.0, %v666_v26  ;;  %v686_v35 = vmul.f32 %v684_v33, %v666_v26 }
 0xea9   :  { %v669_v25 = vpop.permute.xlu0 %668 }
 0xeaa   :  { %v671_v27 = vmul.f32 %v669_v25, %v666_v26 }
 0xeac   :  { %673 = vrot.lane.b32.xlu1 %v671_v27, %s1726_s23 }
 0xf1e   :  { %v674_v28 = vpop.permute.xlu1 %673 }
 0xf1f   :  { %v676_v29 = vadd.f32 %v674_v28, %v1847_v43 }
 0xf21   :  { %1632 = vtanh.f32 %v676_v29 }
 0xf27   :  { %v1633_v30 = vpop.eup %1632 }
 0xf28   :  { %680 = vrot.lane.b32.xlu2 %v1633_v30, %s1727_s26 }
 0xf82   :  { %v681_v34 = vpop.permute.xlu2 %680 }
 0xf83   :  { %v683_v36 = vmul.f32 %v681_v34, %v678_v32 }
 0xf85   :  { %v1945_v38 = vadd.f32 %v686_v35, %v683_v36 }
 0xf87   :  { %v694_v40 = vpack.c.bf16 %v1945_v38, %v1945_v38  ;;  %v754_v6 = vrot.slane %v1945_v38, 7 }
 0xf89   :  { %v696_v42 = vrot.slane %v694_v40, 3 }
 0xf8b   :  { %697 = vrot.lane.b32.xlu0 %v696_v42, %s1727_s26 }
 0xffd   :  { %v698_v44 = vpop.permute.xlu0 %697 }
 0xffe   :  { %1536 = vmatmul.msk.bf16.vlgmr.msra.gmra.mxu3 %vm65_vm1, %v698_v44 }
 0xfff   :  { %1265 = vmatpush.bf16.msra.mxu3 %v1796_v9 }
0x1003   :  { %1266 = vmatpush.bf16.msra.mxu3 %v1805_v15 }
0x1081   :  { %v711_v45 = vpop.f32.mrf.mxu3 }
0x1082   :  { %v712_v46 = vadd.f32 %v711_v45, %v1834_v31 }
0x1084   :  { %v716_v47 = vrot.slane %v712_v46, 1 }
0x1086   :  { %738 = vrot.lane.b32.xlu1 %v716_v47, %s1726_s23  ;;  %v718_v50 = vadd.f32 %v716_v47, %v1847_v43 }
0x1088   :  { %v1537_v51 = vmul.f32 -1.442695, %v718_v50 }
0x1089   :  { %v713_v48 = vpop.f32.mrf.mxu3 }
0x108a   :  { %1634 = vpow2.f32 %v1537_v51 }
0x1090   :  { %v1635_v52 = vpop.eup %1634 }
0x1091   :  { %v722_v53 = vadd.f32 1.0, %v1635_v52 }
0x1093   :  { %1636 = vrcp.f32 %v722_v53  ;;  %v734_v15 = vand.u32 2147483648, %v722_v53  ;;  %vm728_vm2 = vweird.f32 %v722_v53  ;;  %v732_v58 = vand.u32 2147483647, %v722_v53 }
0x1095   :  { %v735_v60 = vor.u32 1.1754944e-38, %v734_v15  ;;  %vm733_vm4 = vcmp.eq.f32.partialorder %v732_v58, 8.507059e+37 }
0x1099   :  { %v1637_v54 = vpop.eup %1636 }
0x109a   :  { %v724_v55 = vmul.f32 %v1637_v54, %v722_v53  ;;  %vm729_vm0 = vweird.f32 %v1637_v54 }
0x109b   :  { %vm730_vm3 = vmor %vm728_vm2, %vm729_vm0 }
0x109c   :  { %v725_v56 = vsub.f32 1.0, %v724_v55 }
0x109e   :  { %v726_v9 = vmul.f32 %v1637_v54, %v725_v56 }
0x10a0   :  { %v727_v57 = vadd.f32 %v1637_v54, %v726_v9 }
0x10a2   :  { %v731_v59 = vsel %vm730_vm3, %v1637_v54, %v727_v57 }
0x10a3   :  { %v736_v63 = vsel %vm733_vm4, %v735_v60, %v731_v59 }
0x10a4   :  { %v748_v5 = vsub.f32 1.0, %v736_v63  ;;  %v756_v8 = vmul.f32 %v754_v6, %v736_v63 }
0x10f8   :  { %v739_v62 = vpop.permute.xlu1 %738 }
0x10f9   :  { %v741_v0 = vmul.f32 %v739_v62, %v736_v63 }
0x10fb   :  { %743 = vrot.lane.b32.xlu2 %v741_v0, %s1726_s23 }
0x1155   :  { %v744_v1 = vpop.permute.xlu2 %743 }
0x1156   :  { %v746_v2 = vadd.f32 %v744_v1, %v1847_v43 }
0x1158   :  { %1638 = vtanh.f32 %v746_v2 }
0x115e   :  { %v1639_v4 = vpop.eup %1638 }
0x115f   :  { %750 = vrot.lane.b32.xlu0 %v1639_v4, %s1727_s26 }
0x11d1   :  { %v751_v7 = vpop.permute.xlu0 %750 }
0x11d2   :  { %v753_v11 = vmul.f32 %v751_v7, %v748_v5 }
0x11d4   :  { %v1960_v12 = vadd.f32 %v756_v8, %v753_v11 }
0x11d6   :  { %v764_v13 = vpack.c.bf16 %v1960_v12, %v1960_v12  ;;  %v824_v47 = vrot.slane %v1960_v12, 7 }
0x11d8   :  { %v766_v16 = vshrl.u32 %v764_v13, 16 }
0x11da   :  { %v768_v17 = vrot.slane %v766_v16, 3 }
0x11dc   :  { %769 = vrot.lane.b32.xlu1 %v768_v17, %s1727_s26 }
0x124e   :  { %v770_v43 = vpop.permute.xlu1 %769 }
0x124f   :  { %1538 = vmatmul.msk.bf16.vlgmr.msrb.gmra.mxu0 %vm65_vm1, %v770_v43 }
0x12cc   :  { %v783_v18 = vpop.f32.mrf.mxu0 }
0x12cd   :  { %v784_v19 = vadd.f32 %v783_v18, %v1834_v31 }
0x12cf   :  { %808 = vrot.lane.b32.xlu2 %v784_v19, %s1726_s23  ;;  %v787_v22 = vadd.f32 %v784_v19, %v1970_v21 }
0x12d1   :  { %v1539_v24 = vmul.f32 -1.442695, %v787_v22 }
0x12d3   :  { %1640 = vpow2.f32 %v1539_v24 }
0x12d4   :  { %v785_v20 = vpop.f32.mrf.mxu0 }
0x12d9   :  { %v1641_v25 = vpop.eup %1640 }
0x12da   :  { %v791_v26 = vadd.f32 1.0, %v1641_v25 }
0x12dc   :  { %1642 = vrcp.f32 %v791_v26  ;;  %v803_v33 = vand.u32 2147483648, %v791_v26  ;;  %vm797_vm6 = vweird.f32 %v791_v26  ;;  %v801_v34 = vand.u32 2147483647, %v791_v26 }
0x12de   :  { %v804_v41 = vor.u32 1.1754944e-38, %v803_v33  ;;  %vm802_vm8 = vcmp.eq.f32.partialorder %v801_v34, 8.507059e+37 }
0x12e2   :  { %v1643_v27 = vpop.eup %1642 }
0x12e3   :  { %v793_v28 = vmul.f32 %v1643_v27, %v791_v26  ;;  %vm798_vm5 = vweird.f32 %v1643_v27 }
0x12e4   :  { %vm799_vm7 = vmor %vm797_vm6, %vm798_vm5 }
0x12e5   :  { %v794_v29 = vsub.f32 1.0, %v793_v28 }
0x12e7   :  { %v795_v30 = vmul.f32 %v1643_v27, %v794_v29 }
0x12e9   :  { %v796_v32 = vadd.f32 %v1643_v27, %v795_v30 }
0x12eb   :  { %v800_v35 = vsel %vm799_vm7, %v1643_v27, %v796_v32 }
0x12ec   :  { %v805_v36 = vsel %vm802_vm8, %v804_v41, %v800_v35 }
0x12ed   :  { %v818_v46 = vsub.f32 1.0, %v805_v36  ;;  %v826_v50 = vmul.f32 %v824_v47, %v805_v36 }
0x1329   :  { %v809_v14 = vpop.permute.xlu2 %808 }
0x132a   :  { %v811_v40 = vmul.f32 %v809_v14, %v805_v36 }
0x132c   :  { %813 = vrot.lane.b32.xlu0 %v811_v40, %s1726_s23 }
0x139e   :  { %v814_v42 = vpop.permute.xlu0 %813 }
0x139f   :  { %v816_v44 = vadd.f32 %v814_v42, %v1970_v21 }
0x13a1   :  { %1644 = vtanh.f32 %v816_v44 }
0x13a7   :  { %v1645_v45 = vpop.eup %1644 }
0x13a8   :  { %820 = vrot.lane.b32.xlu1 %v1645_v45, %s1727_s26 }
0x141a   :  { %v821_v48 = vpop.permute.xlu1 %820 }
0x141b   :  { %v823_v51 = vmul.f32 %v821_v48, %v818_v46 }
0x141d   :  { %v1977_v52 = vadd.f32 %v826_v50, %v823_v51 }
0x141f   :  { %v833_v53 = vpack.c.bf16 %v1977_v52, %v1977_v52  ;;  %v892_v19 = vrot.slane %v1977_v52, 7 }
0x1421   :  { %835 = vrot.lane.b32.xlu2 %v833_v53, %s1727_s26 }
0x147b   :  { %v836_v54 = vpop.permute.xlu2 %835 }
0x147c   :  { %1540 = vmatmul.msk.bf16.vlgmr.msrb.gmra.mxu1 %vm65_vm1, %v836_v54 }
0x14f9   :  { %v849_v55 = vpop.f32.mrf.mxu1 }
0x14fa   :  { %v850_v56 = vadd.f32 %v849_v55, %v1834_v31 }
0x14fc   :  { %v854_v9 = vrot.slane %v850_v56, 7 }
0x14fe   :  { %876 = vrot.lane.b32.xlu0 %v854_v9, %s1726_s23  ;;  %v856_v15 = vadd.f32 %v854_v9, %v1970_v21 }
0x1500   :  { %v1541_v58 = vmul.f32 -1.442695, %v856_v15 }
0x1501   :  { %v851_v57 = vpop.f32.mrf.mxu1 }
0x1502   :  { %1646 = vpow2.f32 %v1541_v58 }
0x1508   :  { %v1647_v59 = vpop.eup %1646 }
0x1509   :  { %v860_v60 = vadd.f32 1.0, %v1647_v59 }
0x150b   :  { %1648 = vrcp.f32 %v860_v60  ;;  %v872_v4 = vand.u32 2147483648, %v860_v60  ;;  %vm866_vm10 = vweird.f32 %v860_v60  ;;  %v870_v5 = vand.u32 2147483647, %v860_v60 }
0x150d   :  { %v873_v7 = vor.u32 1.1754944e-38, %v872_v4  ;;  %vm871_vm12 = vcmp.eq.f32.partialorder %v870_v5, 8.507059e+37 }
0x1511   :  { %v1649_v62 = vpop.eup %1648 }
0x1512   :  { %v862_v63 = vmul.f32 %v1649_v62, %v860_v60  ;;  %vm867_vm9 = vweird.f32 %v1649_v62 }
0x1513   :  { %vm868_vm11 = vmor %vm866_vm10, %vm867_vm9 }
0x1514   :  { %v863_v0 = vsub.f32 1.0, %v862_v63 }
0x1516   :  { %v864_v1 = vmul.f32 %v1649_v62, %v863_v0 }
0x1518   :  { %v865_v2 = vadd.f32 %v1649_v62, %v864_v1 }
0x151a   :  { %v869_v6 = vsel %vm868_vm11, %v1649_v62, %v865_v2  ;;  %v2012_v2 = vld [vmem:[%s2159_s6 + $0x2] sm:$0x1] }
0x151b   :  { %v874_v11 = vsel %vm871_vm12, %v873_v7, %v869_v6 }
0x151c   :  { %v886_v18 = vsub.f32 1.0, %v874_v11  ;;  %v894_v22 = vmul.f32 %v892_v19, %v874_v11 }
0x1570   :  { %v877_v8 = vpop.permute.xlu0 %876 }
0x1571   :  { %v879_v13 = vmul.f32 %v877_v8, %v874_v11 }
0x1573   :  { %881 = vrot.lane.b32.xlu1 %v879_v13, %s1726_s23 }
0x15e5   :  { %v882_v16 = vpop.permute.xlu1 %881 }
0x15e6   :  { %v884_v17 = vadd.f32 %v882_v16, %v1970_v21 }
0x15e8   :  { %1650 = vtanh.f32 %v884_v17 }
0x15ee   :  { %v1651_v43 = vpop.eup %1650 }
0x15ef   :  { %888 = vrot.lane.b32.xlu2 %v1651_v43, %s1727_s26 }
0x1649   :  { %v889_v20 = vpop.permute.xlu2 %888 }
0x164a   :  { %v891_v24 = vmul.f32 %v889_v20, %v886_v18 }
0x164c   :  { %v1990_v25 = vadd.f32 %v894_v22, %v891_v24 }
0x164e   :  { %v901_v26 = vpack.c.bf16 %v1990_v25, %v1990_v25  ;;  %v962_v57 = vrot.slane %v1990_v25, 7 }
0x1650   :  { %v903_v27 = vshrl.u32 %v901_v26, 16 }
0x1652   :  { %905 = vrot.lane.b32.xlu0 %v903_v27, %s1727_s26 }
0x16c4   :  { %v906_v28 = vpop.permute.xlu0 %905 }
0x16c5   :  { %1542 = vmatmul.msk.bf16.vlgmr.msrb.gmra.mxu2 %vm65_vm1, %v906_v28 }
0x1748   :  { %v919_v29 = vpop.f32.mrf.mxu2 }
0x1749   :  { %v920_v30 = vadd.f32 %v919_v29, %v1834_v31 }
0x174b   :  { %v924_v32 = vrot.slane %v920_v30, 6 }
0x174d   :  { %946 = vrot.lane.b32.xlu1 %v924_v32, %s1726_s23  ;;  %v926_v34 = vadd.f32 %v924_v32, %v1970_v21 }
0x174f   :  { %v1543_v35 = vmul.f32 -1.442695, %v926_v34 }
0x1750   :  { %v921_v33 = vpop.f32.mrf.mxu2 }
0x1751   :  { %1652 = vpow2.f32 %v1543_v35 }
0x1757   :  { %v1653_v41 = vpop.eup %1652 }
0x1758   :  { %v930_v14 = vadd.f32 1.0, %v1653_v41 }
0x175a   :  { %1654 = vrcp.f32 %v930_v14  ;;  %v942_v46 = vand.u32 2147483648, %v930_v14  ;;  %vm936_vm14 = vweird.f32 %v930_v14  ;;  %v940_v31 = vand.u32 2147483647, %v930_v14 }
0x175c   :  { %v943_v48 = vor.u32 1.1754944e-38, %v942_v46  ;;  %vm941_vm0 = vcmp.eq.f32.partialorder %v940_v31, 8.507059e+37  ;;  %v1583_v46 = vld [vmem:[%s2157_s4 + $0x8] sm:$0xff]  ;;  %v1582_v31 = vld [vmem:[%s2157_s4] sm:$0xff] }
0x175d   :  { %1348 = vmatpush.bf16.msrb.mxu0 %v1583_v46 }
0x1760   :  { %v1655_v36 = vpop.eup %1654 }
0x1761   :  { %v932_v40 = vmul.f32 %v1655_v36, %v930_v14  ;;  %vm937_vm13 = vweird.f32 %v1655_v36  ;;  %1349 = vmatpush.bf16.msrb.mxu0 %v1582_v31 }
0x1762   :  { %vm938_vm15 = vmor %vm936_vm14, %vm937_vm13 }
0x1763   :  { %v933_v42 = vsub.f32 1.0, %v932_v40 }
0x1765   :  { %v934_v44 = vmul.f32 %v1655_v36, %v933_v42 }
0x1767   :  { %v935_v45 = vadd.f32 %v1655_v36, %v934_v44 }
0x1769   :  { %v939_v47 = vsel %vm938_vm15, %v1655_v36, %v935_v45 }
0x176a   :  { %v944_v51 = vsel %vm941_vm0, %v943_v48, %v939_v47  ;;  %v157_v47 = vrot.slane %v1839_v39, 4 }
0x176b   :  { %v956_v9 = vsub.f32 1.0, %v944_v51  ;;  %v964_v58 = vmul.f32 %v962_v57, %v944_v51 }
0x176c   :  { %v158_v48 = vmax.f32 %v1839_v39, %v157_v47 }
0x17bf   :  { %v947_v50 = vpop.permute.xlu1 %946 }
0x17c0   :  { %v949_v53 = vmul.f32 %v947_v50, %v944_v51  ;;  %v159_v50 = vrot.slane %v158_v48, 2 }
0x17c2   :  { %951 = vrot.lane.b32.xlu2 %v949_v53, %s1726_s23  ;;  %v160_v53 = vmax.f32 %v158_v48, %v159_v50 }
0x181c   :  { %v952_v54 = vpop.permute.xlu2 %951 }
0x181d   :  { %v954_v55 = vadd.f32 %v952_v54, %v1970_v21  ;;  %v161_v54 = vrot.slane %v160_v53, 1 }
0x181f   :  { %1656 = vtanh.f32 %v954_v55  ;;  %v162_v55 = vmax.f32 %v160_v53, %v161_v54 }
0x1825   :  { %v1657_v56 = vpop.eup %1656 }
0x1826   :  { %958 = vrot.lane.b32.xlu0 %v1657_v56, %s1727_s26  ;;  %v1322_v56 = vpack.c.bf16 %v162_v55, %v162_v55 }
0x1898   :  { %v959_v15 = vpop.permute.xlu0 %958 }
0x1899   :  { %v961_v59 = vmul.f32 %v959_v15, %v956_v9 }
0x189b   :  { %v2003_v60 = vadd.f32 %v964_v58, %v961_v59 }
0x189d   :  { %v971_v62 = vpack.c.bf16 %v2003_v60, %v2003_v60  ;;  %v1031_v35 = vrot.slane %v2003_v60, 7 }
0x189f   :  { %v973_v63 = vrot.slane %v971_v62, 1 }
0x18a1   :  { %974 = vrot.lane.b32.xlu1 %v973_v63, %s1727_s26 }
0x1913   :  { %v975_v0 = vpop.permute.xlu1 %974 }
0x1914   :  { %1544 = vmatmul.msk.bf16.vlgmr.msrb.gmra.mxu3 %vm65_vm1, %v975_v0 }
0x1997   :  { %v988_v1 = vpop.f32.mrf.mxu3 }
0x1998   :  { %v989_v4 = vadd.f32 %v2012_v2, %v988_v1 }
0x199a   :  { %v993_v5 = vrot.slane %v989_v4, 5 }
0x199c   :  { %1015 = vrot.lane.b32.xlu2 %v993_v5, %s1726_s23  ;;  %v995_v7 = vadd.f32 %v993_v5, %v1970_v21 }
0x199e   :  { %v1545_v8 = vmul.f32 -1.442695, %v995_v7 }
0x199f   :  { %v990_v6 = vpop.f32.mrf.mxu3 }
0x19a0   :  { %1658 = vpow2.f32 %v1545_v8 }
0x19a6   :  { %v1659_v11 = vpop.eup %1658 }
0x19a7   :  { %v999_v13 = vadd.f32 1.0, %v1659_v11 }
0x19a9   :  { %1660 = vrcp.f32 %v999_v13  ;;  %v1011_v20 = vand.u32 2147483648, %v999_v13  ;;  %vm1005_vm3 = vweird.f32 %v999_v13  ;;  %v1009_v22 = vand.u32 2147483647, %v999_v13 }
0x19ab   :  { %v1012_v26 = vor.u32 1.1754944e-38, %v1011_v20  ;;  %vm1010_vm5 = vcmp.eq.f32.partialorder %v1009_v22, 8.507059e+37 }
0x19af   :  { %v1661_v16 = vpop.eup %1660 }
0x19b0   :  { %v1001_v17 = vmul.f32 %v1661_v16, %v999_v13  ;;  %vm1006_vm2 = vweird.f32 %v1661_v16 }
0x19b1   :  { %vm1007_vm4 = vmor %vm1005_vm3, %vm1006_vm2 }
0x19b2   :  { %v1002_v43 = vsub.f32 1.0, %v1001_v17 }
0x19b4   :  { %v1003_v18 = vmul.f32 %v1661_v16, %v1002_v43 }
0x19b6   :  { %v1004_v19 = vadd.f32 %v1661_v16, %v1003_v18 }
0x19b8   :  { %v1008_v24 = vsel %vm1007_vm4, %v1661_v16, %v1004_v19 }
0x19b9   :  { %v1013_v28 = vsel %vm1010_vm5, %v1012_v26, %v1008_v24 }
0x19ba   :  { %v1025_v34 = vsub.f32 1.0, %v1013_v28  ;;  %v1033_v14 = vmul.f32 %v1031_v35, %v1013_v28 }
0x19f6   :  { %v1016_v27 = vpop.permute.xlu2 %1015 }
0x19f7   :  { %v1018_v29 = vmul.f32 %v1016_v27, %v1013_v28 }
0x19f9   :  { %1020 = vrot.lane.b32.xlu0 %v1018_v29, %s1726_s23 }
0x1a6b   :  { %v1021_v30 = vpop.permute.xlu0 %1020 }
0x1a6c   :  { %v1023_v32 = vadd.f32 %v1021_v30, %v1970_v21 }
0x1a6e   :  { %1662 = vtanh.f32 %v1023_v32 }
0x1a74   :  { %v1663_v33 = vpop.eup %1662 }
0x1a75   :  { %1027 = vrot.lane.b32.xlu1 %v1663_v33, %s1727_s26 }
0x1ae7   :  { %v1028_v41 = vpop.permute.xlu1 %1027 }
0x1ae8   :  { %v1030_v36 = vmul.f32 %v1028_v41, %v1025_v34 }
0x1aea   :  { %v2021_v40 = vadd.f32 %v1033_v14, %v1030_v36 }
0x1aec   :  { %v1040_v42 = vpack.c.bf16 %v2021_v40, %v2021_v40  ;;  %v1102_v27 = vrot.slane %v2021_v40, 7 }
0x1aee   :  { %v1042_v44 = vshrl.u32 %v1040_v42, 16 }
0x1af0   :  { %v1044_v45 = vrot.slane %v1042_v44, 1 }
0x1af2   :  { %1045 = vrot.lane.b32.xlu2 %v1044_v45, %s1727_s26 }
0x1b4c   :  { %v1046_v51 = vpop.permute.xlu2 %1045 }
0x1b4d   :  { %1546 = vmatmul.msk.bf16.vlgmr.msra.gmra.mxu0 %vm65_vm1, %v1046_v51 }
0x1b5d   :  { %1562 = vmatmul.msk.bf16.vlgmr.msrb.gmra.mxu0 %vm65_vm1, %v1322_v56 }
0x1bca   :  { %v1059_v9 = vpop.f32.mrf.mxu0 }
0x1bcb   :  { %v1060_v57 = vadd.f32 %v2012_v2, %v1059_v9 }
0x1bcd   :  { %v1064_v15 = vrot.slane %v1060_v57, 4 }
0x1bcf   :  { %1086 = vrot.lane.b32.xlu0 %v1064_v15, %s1726_s23  ;;  %v1066_v62 = vadd.f32 %v1064_v15, %v1970_v21 }
0x1bd1   :  { %v1547_v63 = vmul.f32 -1.442695, %v1066_v62 }
0x1bd2   :  { %v1061_v58 = vpop.f32.mrf.mxu0 }
0x1bd3   :  { %1664 = vpow2.f32 %v1547_v63 }
0x1bd9   :  { %v1665_v0 = vpop.eup %1664 }
0x1bda   :  { %v2038_v59 = vpop.f32.mrf.mxu0  ;;  %v1070_v1 = vadd.f32 1.0, %v1665_v0 }
0x1bdc   :  { %1666 = vrcp.f32 %v1070_v1  ;;  %v1082_v11 = vand.u32 2147483648, %v1070_v1  ;;  %vm1076_vm7 = vweird.f32 %v1070_v1  ;;  %v1080_v13 = vand.u32 2147483647, %v1070_v1 }
0x1bde   :  { %v1083_v17 = vor.u32 1.1754944e-38, %v1082_v11  ;;  %vm1081_vm9 = vcmp.eq.f32.partialorder %v1080_v13, 8.507059e+37 }
0x1be2   :  { %v1353_v39 = vpop.f32.mrf.mxu0  ;;  %v1667_v4 = vpop.eup %1666 }
0x1be3   :  { %v1072_v5 = vmul.f32 %v1667_v4, %v1070_v1  ;;  %vm1077_vm6 = vweird.f32 %v1667_v4 }
0x1be4   :  { %vm1078_vm8 = vmor %vm1076_vm7, %vm1077_vm6  ;;  %vm268_vm7 = vcmask 253952  }
0x1be5   :  { %v1073_v6 = vsub.f32 1.0, %v1072_v5 }
0x1be7   :  { %v1074_v7 = vmul.f32 %v1667_v4, %v1073_v6 }
0x1be9   :  { %v1075_v8 = vadd.f32 %v1667_v4, %v1074_v7 }
0x1beb   :  { %v1079_v16 = vsel %vm1078_vm8, %v1667_v4, %v1075_v8  ;;  %vm478_vm8 = vcmask 257027  }
0x1bec   :  { %v1084_v18 = vsel %vm1081_vm9, %v1083_v17, %v1079_v16  ;;  %vm692_vm9 = vcmask 260102  }
0x1bed   :  { %v1096_v26 = vsub.f32 1.0, %v1084_v18  ;;  %v1104_v29 = vmul.f32 %v1102_v27, %v1084_v18 }
0x1c41   :  { %v1087_v43 = vpop.permute.xlu0 %1086 }
0x1c42   :  { %v1089_v19 = vmul.f32 %v1087_v43, %v1084_v18 }
0x1c44   :  { %1091 = vrot.lane.b32.xlu1 %v1089_v19, %s1726_s23 }
0x1cb6   :  { %v1092_v20 = vpop.permute.xlu1 %1091 }
0x1cb7   :  { %v1094_v22 = vadd.f32 %v1092_v20, %v1970_v21 }
0x1cb9   :  { %1668 = vtanh.f32 %v1094_v22 }
0x1cbf   :  { %v1669_v24 = vpop.eup %1668 }
0x1cc0   :  { %1098 = vrot.lane.b32.xlu2 %v1669_v24, %s1727_s26 }
0x1d1a   :  { %v1099_v28 = vpop.permute.xlu2 %1098 }
0x1d1b   :  { %v1101_v30 = vmul.f32 %v1099_v28, %v1096_v26 }
0x1d1d   :  { %v2045_v32 = vadd.f32 %v1104_v29, %v1101_v30 }
0x1d1f   :  { %v1111_v33 = vpack.c.bf16 %v2045_v32, %v2045_v32  ;;  %v1171_v1 = vrot.slane %v2045_v32, 7 }
0x1d21   :  { %v1113_v34 = vrot.slane %v1111_v33, 2 }
0x1d23   :  { %1114 = vrot.lane.b32.xlu0 %v1113_v34, %s1727_s26 }
0x1d95   :  { %v1115_v35 = vpop.permute.xlu0 %1114 }
0x1d96   :  { %1548 = vmatmul.msk.bf16.vlgmr.msra.gmra.mxu1 %vm65_vm1, %v1115_v35 }
0x1e13   :  { %v1128_v41 = vpop.f32.mrf.mxu1 }
0x1e14   :  { %v1129_v14 = vadd.f32 %v2012_v2, %v1128_v41 }
0x1e16   :  { %v1133_v36 = vrot.slane %v1129_v14, 3 }
0x1e18   :  { %1155 = vrot.lane.b32.xlu1 %v1133_v36, %s1726_s23  ;;  %v1135_v44 = vadd.f32 %v1133_v36, %v1970_v21 }
0x1e1a   :  { %v1549_v45 = vmul.f32 -1.442695, %v1135_v44 }
0x1e1b   :  { %v1130_v42 = vpop.f32.mrf.mxu1 }
0x1e1c   :  { %1670 = vpow2.f32 %v1549_v45 }
0x1e22   :  { %v1671_v46 = vpop.eup %1670 }
0x1e23   :  { %v1139_v31 = vadd.f32 1.0, %v1671_v46 }
0x1e25   :  { %1672 = vrcp.f32 %v1139_v31  ;;  %v1151_v54 = vand.u32 2147483648, %v1139_v31  ;;  %vm1145_vm11 = vweird.f32 %v1139_v31  ;;  %v1149_v55 = vand.u32 2147483647, %v1139_v31 }
0x1e27   :  { %v1152_v9 = vor.u32 1.1754944e-38, %v1151_v54  ;;  %vm1150_vm13 = vcmp.eq.f32.partialorder %v1149_v55, 8.507059e+37 }
0x1e2b   :  { %v1673_v47 = vpop.eup %1672 }
0x1e2c   :  { %v1141_v48 = vmul.f32 %v1673_v47, %v1139_v31  ;;  %vm1146_vm10 = vweird.f32 %v1673_v47 }
0x1e2d   :  { %vm1147_vm12 = vmor %vm1145_vm11, %vm1146_vm10  ;;  %vm337_vm10 = vcmask 254977   ;;  %vm550_vm11 = vcmask 258052  }
0x1e2e   :  { %v1142_v50 = vsub.f32 1.0, %v1141_v48 }
0x1e30   :  { %v1143_v51 = vmul.f32 %v1673_v47, %v1142_v50 }
0x1e32   :  { %v1144_v53 = vadd.f32 %v1673_v47, %v1143_v51 }
0x1e34   :  { %v1148_v56 = vsel %vm1147_vm12, %v1673_v47, %v1144_v53  ;;  %vm762_vm12 = vcmask 261127  }
0x1e35   :  { %v1153_v15 = vsel %vm1150_vm13, %v1152_v9, %v1148_v56  ;;  %vm408_vm13 = vcmask 256002  }
0x1e36   :  { %v1165_v0 = vsub.f32 1.0, %v1153_v15  ;;  %v1173_v5 = vmul.f32 %v1171_v1, %v1153_v15 }
0x1e8a   :  { %v1156_v57 = vpop.permute.xlu1 %1155 }
0x1e8b   :  { %v1158_v58 = vmul.f32 %v1156_v57, %v1153_v15 }
0x1e8d   :  { %1160 = vrot.lane.b32.xlu2 %v1158_v58, %s1726_s23 }
0x1ee7   :  { %v1161_v39 = vpop.permute.xlu2 %1160 }
0x1ee8   :  { %v1163_v62 = vadd.f32 %v1161_v39, %v1970_v21 }
0x1eea   :  { %1674 = vtanh.f32 %v1163_v62 }
0x1ef0   :  { %v1675_v63 = vpop.eup %1674 }
0x1ef1   :  { %1167 = vrot.lane.b32.xlu0 %v1675_v63, %s1727_s26 }
0x1f63   :  { %v1168_v4 = vpop.permute.xlu0 %1167 }
0x1f64   :  { %v1170_v6 = vmul.f32 %v1168_v4, %v1165_v0 }
0x1f66   :  { %v2058_v7 = vadd.f32 %v1173_v5, %v1170_v6 }
0x1f68   :  { %v1180_v8 = vpack.c.bf16 %v2058_v7, %v2058_v7  ;;  %v1242_v48 = vrot.slane %v2058_v7, 7 }
0x1f6a   :  { %v1182_v11 = vshrl.u32 %v1180_v8, 16 }
0x1f6c   :  { %v1184_v13 = vrot.slane %v1182_v11, 2 }
0x1f6e   :  { %1185 = vrot.lane.b32.xlu1 %v1184_v13, %s1727_s26 }
0x1fe0   :  { %v1186_v16 = vpop.permute.xlu1 %1185 }
0x1fe1   :  { %1550 = vmatmul.msk.bf16.vlgmr.msra.gmra.mxu2 %vm65_vm1, %v1186_v16 }
0x2064   :  { %v1199_v17 = vpop.f32.mrf.mxu2 }
0x2065   :  { %v1200_v43 = vadd.f32 %v2012_v2, %v1199_v17 }
0x2067   :  { %v1204_v18 = vrot.slane %v1200_v43, 2 }
0x2069   :  { %1226 = vrot.lane.b32.xlu2 %v1204_v18, %s1726_s23  ;;  %v1206_v20 = vadd.f32 %v1204_v18, %v1970_v21 }
0x206b   :  { %v1551_v22 = vmul.f32 -1.442695, %v1206_v20 }
0x206c   :  { %v1201_v19 = vpop.f32.mrf.mxu2 }
0x206d   :  { %1676 = vpow2.f32 %v1551_v22 }
0x2073   :  { %v1677_v24 = vpop.eup %1676 }
0x2074   :  { %v1210_v26 = vadd.f32 1.0, %v1677_v24 }
0x2076   :  { %1678 = vrcp.f32 %v1210_v26  ;;  %v1222_v34 = vand.u32 2147483648, %v1210_v26  ;;  %vm1216_vm15 = vweird.f32 %v1210_v26  ;;  %v1220_v35 = vand.u32 2147483647, %v1210_v26 }
0x2078   :  { %v1223_v14 = vor.u32 1.1754944e-38, %v1222_v34  ;;  %vm1221_vm2 = vcmp.eq.f32.partialorder %v1220_v35, 8.507059e+37 }
0x207c   :  { %v1679_v27 = vpop.eup %1678 }
0x207d   :  { %v1212_v28 = vmul.f32 %v1679_v27, %v1210_v26  ;;  %vm1217_vm14 = vweird.f32 %v1679_v27 }
0x207e   :  { %vm1218_vm0 = vmor %vm1216_vm15, %vm1217_vm14  ;;  %vm620_vm14 = vcmask 259077   ;;  %vm1437_vm15 = vcmask 24576  }
0x207f   :  { %v1213_v29 = vsub.f32 1.0, %v1212_v28 }
0x2081   :  { %v1214_v30 = vmul.f32 %v1679_v27, %v1213_v29 }
0x2083   :  { %v1215_v33 = vadd.f32 %v1679_v27, %v1214_v30 }
0x2085   :  { %v1219_v41 = vsel %vm1218_vm0, %v1679_v27, %v1215_v33 }
0x2086   :  { %v1224_v42 = vsel %vm1221_vm2, %v1223_v14, %v1219_v41 }
0x2087   :  { %v1236_v47 = vsub.f32 1.0, %v1224_v42  ;;  %v1244_v51 = vmul.f32 %v1242_v48, %v1224_v42 }
0x20c3   :  { %v1227_v36 = vpop.permute.xlu2 %1226 }
0x20c4   :  { %v1229_v44 = vmul.f32 %v1227_v36, %v1224_v42 }
0x20c6   :  { %1231 = vrot.lane.b32.xlu0 %v1229_v44, %s1726_s23 }
0x2138   :  { %v1232_v45 = vpop.permute.xlu0 %1231 }
0x2139   :  { %v1234_v46 = vadd.f32 %v1232_v45, %v1970_v21 }
0x213b   :  { %1680 = vtanh.f32 %v1234_v46 }
0x2141   :  { %v1681_v31 = vpop.eup %1680 }
0x2142   :  { %1238 = vrot.lane.b32.xlu1 %v1681_v31, %s1727_s26 }
0x21b4   :  { %v1239_v50 = vpop.permute.xlu1 %1238 }
0x21b5   :  { %v1241_v53 = vmul.f32 %v1239_v50, %v1236_v47 }
0x21b7   :  { %v2071_v54 = vadd.f32 %v1244_v51, %v1241_v53 }
0x21b9   :  { %v1251_v55 = vpack.c.bf16 %v2071_v54, %v2071_v54 }
0x21bb   :  { %v1253_v56 = vrot.slane %v1251_v55, 3 }
0x21bd   :  { %1254 = vrot.lane.b32.xlu2 %v1253_v56, %s1727_s26 }
0x2217   :  { %v1255_v9 = vpop.permute.xlu2 %1254 }
0x2218   :  { %1552 = vmatmul.msk.bf16.vlgmr.msra.gmra.mxu3 %vm65_vm1, %v1255_v9 }
0x229b   :  { %v1268_v57 = vpop.f32.mrf.mxu3 }
0x229c   :  { %v1269_v15 = vadd.f32 %v2012_v2, %v1268_v57 }
0x229e   :  { %v1273_v58 = vrot.slane %v1269_v15, 1 }
0x22a0   :  { %1295 = vrot.lane.b32.xlu0 %v1273_v58, %s1726_s23  ;;  %v1275_v2 = vadd.f32 %v1273_v58, %v1970_v21 }
0x22a2   :  { %v1553_v62 = vmul.f32 -1.442695, %v1275_v2 }
0x22a3   :  { %v1270_v39 = vpop.f32.mrf.mxu3 }
0x22a4   :  { %1682 = vpow2.f32 %v1553_v62  ;;  %v1585_v39 = vld [vmem:[%s2158_s5 + $0x8] sm:$0xff]  ;;  %v1584_v62 = vld [vmem:[%s2158_s5] sm:$0xff] }
0x22a5   :  { %1429 = vmatpush.bf16.msrb.mxu1 %v1585_v39 }
0x22a8   :  { %265 = vrot.lane.b32.xlu0 %v1853_v3, %s1727_s26 }
0x22a9   :  { %1430 = vmatpush.bf16.msrb.mxu1 %v1584_v62 }
0x22aa   :  { %v1683_v63 = vpop.eup %1682 }
0x22ab   :  { %v1279_v0 = vadd.f32 1.0, %v1683_v63 }
0x22ad   :  { %1684 = vrcp.f32 %v1279_v0  ;;  %vm1285_vm4 = vweird.f32 %v1279_v0  ;;  %v1289_v6 = vand.u32 2147483647, %v1279_v0 }
0x22af   :  { %vm1290_vm6 = vcmp.eq.f32.partialorder %v1289_v6, 8.507059e+37 }
0x22b0   :  { %475 = vrot.lane.b32.xlu0 %v1900_v49, %s1727_s26 }
0x22b3   :  { %v1685_v3 = vpop.eup %1684 }
0x22b4   :  { %v1281_v1 = vmul.f32 %v1685_v3, %v1279_v0  ;;  %vm1286_vm3 = vweird.f32 %v1685_v3 }
0x22b5   :  { %vm1287_vm5 = vmor %vm1285_vm4, %vm1286_vm3 }
0x22b6   :  { %v1282_v4 = vsub.f32 1.0, %v1281_v1 }
0x22b8   :  { %689 = vrot.lane.b32.xlu0 %v1945_v38, %s1727_s26  ;;  %v1283_v49 = vmul.f32 %v1685_v3, %v1282_v4  ;;  %v1291_v38 = vand.u32 2147483648, %v1279_v0 }
0x22ba   :  { %v1284_v5 = vadd.f32 %v1685_v3, %v1283_v49  ;;  %v1292_v8 = vor.u32 1.1754944e-38, %v1291_v38 }
0x22c0   :  { %897 = vrot.lane.b32.xlu0 %v1990_v25, %s1727_s26  ;;  %v1288_v25 = vsel %vm1287_vm5, %v1685_v3, %v1284_v5 }
0x22c1   :  { %v1293_v11 = vsel %vm1290_vm6, %v1292_v8, %v1288_v25 }
0x22c8   :  { %1107 = vrot.lane.b32.xlu0 %v2045_v32, %s1727_s26 }
0x2312   :  { %v1296_v32 = vpop.permute.xlu0 %1295 }
0x2313   :  { %v1298_v13 = vmul.f32 %v1296_v32, %v1293_v11 }
0x2315   :  { %1300 = vrot.lane.b32.xlu1 %v1298_v13, %s1726_s23 }
0x231a   :  { %v266_v16 = vpop.permute.xlu0 %265 }
0x231b   :  { %269 = vst.msk [vmem:[#allocation2] sm:$0x1] %vm268_vm7, %v266_v16 }
0x231d   :  { %334 = vrot.lane.b32.xlu1 %v1868_v37, %s1727_s26 }
0x2322   :  { %v476_v17 = vpop.permute.xlu0 %475 }
0x2323   :  { %479 = vst.msk [vmem:[#allocation2] sm:$0x8] %vm478_vm8, %v476_v17 }
0x2325   :  { %547 = vrot.lane.b32.xlu1 %v1915_v23, %s1727_s26 }
0x232a   :  { %v690_v43 = vpop.permute.xlu0 %689 }
0x232b   :  { %693 = vst.msk [vmem:[#allocation2] sm:$0x40] %vm692_vm9, %v690_v43 }
0x232d   :  { %759 = vrot.lane.b32.xlu1 %v1960_v12, %s1727_s26 }
0x2332   :  { %v898_v18 = vpop.permute.xlu0 %897 }
0x2333   :  { %900 = vst.msk [vmem:[#allocation2 + $0x8] sm:$0x2] %vm337_vm10, %v898_v18 }
0x2335   :  { %967 = vrot.lane.b32.xlu1 %v2003_v60, %s1727_s26 }
0x233a   :  { %v1108_v37 = vpop.permute.xlu0 %1107 }
0x233b   :  { %1110 = vst.msk [vmem:[#allocation2 + $0x8] sm:$0x10] %vm550_vm11, %v1108_v37 }
0x233d   :  { %1176 = vrot.lane.b32.xlu1 %v2058_v7, %s1727_s26 }
0x2387   :  { %v1301_v23 = vpop.permute.xlu1 %1300 }
0x2388   :  { %v1303_v19 = vadd.f32 %v1301_v23, %v1970_v21 }
0x238a   :  { %1686 = vtanh.f32 %v1303_v19 }
0x238f   :  { %v335_v20 = vpop.permute.xlu1 %334 }
0x2390   :  { %v1687_v22 = vpop.eup %1686  ;;  %338 = vst.msk [vmem:[#allocation2] sm:$0x2] %vm337_vm10, %v335_v20 }
0x2391   :  { %1307 = vrot.lane.b32.xlu2 %v1687_v22, %s1727_s26 }
0x2397   :  { %v548_v12 = vpop.permute.xlu1 %547 }
0x2398   :  { %551 = vst.msk [vmem:[#allocation2] sm:$0x10] %vm550_vm11, %v548_v12 }
0x2399   :  { %405 = vrot.lane.b32.xlu2 %v1883_v10, %s1727_s26  ;;  %v1305_v10 = vsub.f32 1.0, %v1293_v11 }
0x239f   :  { %v760_v60 = vpop.permute.xlu1 %759 }
0x23a0   :  { %763 = vst.msk [vmem:[#allocation2] sm:$0x80] %vm762_vm12, %v760_v60 }
0x23a1   :  { %617 = vrot.lane.b32.xlu2 %v1930_v61, %s1727_s26  ;;  %v1311_v61 = vrot.slane %v2071_v54, 7 }
0x23a3   :  { %v1313_v26 = vmul.f32 %v1311_v61, %v1293_v11 }
0x23a7   :  { %v968_v21 = vpop.permute.xlu1 %967 }
0x23a8   :  { %970 = vst.msk [vmem:[#allocation2 + $0x8] sm:$0x4] %vm408_vm13, %v968_v21  ;;  %v32_v21 = vld [vmem:[%s2159_s6 + $0x4] sm:$0x1] }
0x23a9   :  { %829 = vrot.lane.b32.xlu2 %v1977_v52, %s1727_s26 }
0x23af   :  { %v1177_v7 = vpop.permute.xlu1 %1176 }
0x23b0   :  { %1179 = vst.msk [vmem:[#allocation2 + $0x8] sm:$0x20] %vm620_vm14, %v1177_v7 }
0x23b1   :  { %1036 = vrot.lane.b32.xlu2 %v2021_v40, %s1727_s26  ;;  %v31_v40 = vld [vmem:[%s2159_s6 + $0x3] sm:$0x1]  ;;  %s1728_s6 = smov [#allocation3]  }
0x23b2   :  { %v1355_v30 = vadd.f32 %v2038_v59, %v31_v40  ;;  %s1468_s16 = sshll.u32 %s1728_s6, 4  ;;  %s1469_s16 = int_to_ptr.vmem [resolvable:$true] %s1468_s16 }
0x23b4   :  { %v1356_v33 = vperm.slane %v1355_v30, 0 }
0x23b9   :  { %1247 = vrot.lane.b32.xlu2 %v2071_v54, %s1727_s26 }
0x23eb   :  { %v1308_v24 = vpop.permute.xlu2 %1307 }
0x23ec   :  { %v1310_v27 = vmul.f32 %v1308_v24, %v1305_v10 }
0x23ee   :  { %v1314_v28 = vadd.f32 %v1313_v26, %v1310_v27 }
0x23f0   :  { %1316 = vrot.lane.b32.xlu0 %v1314_v28, %s1727_s26 }
0x23f3   :  { %v406_v52 = vpop.permute.xlu2 %405 }
0x23f4   :  { %409 = vst.msk [vmem:[#allocation2] sm:$0x4] %vm408_vm13, %v406_v52 }
0x23f8   :  { %1417 = vrot.lane.b32.xlu0 %v2038_v59, %s1727_s26 }
0x23fb   :  { %v618_v29 = vpop.permute.xlu2 %617 }
0x23fc   :  { %621 = vst.msk [vmem:[#allocation2] sm:$0x20] %vm620_vm14, %v618_v29 }
0x2403   :  { %v830_v34 = vpop.permute.xlu2 %829  ;;  %v1320_v35 = vld [vmem:[#allocation2] sm:$0xff] }
0x2404   :  { %832 = vst.msk [vmem:[#allocation2 + $0x8] sm:$0x1] %vm268_vm7, %v830_v34  ;;  %v1357_v41 = vmul.f32 %v1356_v33, %v1320_v35 }
0x2406   :  { %v1359_v14 = vsel %vm65_vm1, %v1357_v41, 0.0 }
0x2407   :  { %1360 = vadd.xlane.f32.xlu1 %v1359_v14 }
0x240b   :  { %v1037_v36 = vpop.permute.xlu2 %1036 }
0x240c   :  { %1039 = vst.msk [vmem:[#allocation2 + $0x8] sm:$0x8] %vm478_vm8, %v1037_v36 }
0x2413   :  { %v1248_v42 = vpop.permute.xlu2 %1247 }
0x2414   :  { %1250 = vst.msk [vmem:[#allocation2 + $0x8] sm:$0x40] %vm692_vm9, %v1248_v42 }
0x2462   :  { %v1317_v44 = vpop.permute.xlu0 %1316 }
0x2463   :  { %1319 = vst.msk [vmem:[#allocation2 + $0x8] sm:$0x80] %vm762_vm12, %v1317_v44 }
0x246a   :  { %v1321_v45 = vld [vmem:[#allocation2 + $0x8] sm:$0xff]  ;;  %v1418_v12 = vpop.permute.xlu0 %1417 }
0x246b   :  { %v1358_v59 = vmul.f32 %v1356_v33, %v1321_v45 }
0x246d   :  { %v1362_v46 = vsel %vm65_vm1, %v1358_v59, 0.0 }
0x246e   :  { %1363 = vadd.xlane.f32.xlu2 %v1362_v46 }
0x247a   :  { %v1361_v31 = vpop.xlane.xlu1 %1360 }
0x24e1   :  { %v1364_v47 = vpop.xlane.xlu2 %1363 }
0x24e2   :  { %v1365_v48 = vmax.f32 %v1361_v31, %v1364_v47 }
0x24e4   :  { %v1366_v50 = vrot.slane %v1365_v48, 4 }
0x24e6   :  { %v1367_v51 = vmax.f32 %v1365_v48, %v1366_v50 }
0x24e8   :  { %v1368_v53 = vrot.slane %v1367_v51, 2 }
0x24ea   :  { %v1369_v54 = vmax.f32 %v1367_v51, %v1368_v53 }
0x24ec   :  { %v1370_v55 = vrot.slane %v1369_v54, 1 }
0x24ee   :  { %v1371_v56 = vmax.f32 %v1369_v54, %v1370_v55 }
0x24f0   :  { %v1372_v9 = vsub.f32 %v1361_v31, %v1371_v56  ;;  %v1373_v57 = vsub.f32 %v1364_v47, %v1371_v56 }
0x24f2   :  { %v1374_v15 = vmul.f32 1.442695, %v1372_v9  ;;  %v1376_v58 = vmul.f32 1.442695, %v1373_v57 }
0x24f4   :  { %1688 = vpow2.f32 %v1374_v15 }
0x24f5   :  { %1690 = vpow2.f32 %v1376_v58 }
0x24fa   :  { %v1689_v2 = vpop.eup %1688 }
0x24fb   :  { %v1691_v63 = vpop.eup %1690 }
0x24fc   :  { %v1378_v0 = vadd.f32 %v1691_v63, %v1689_v2 }
0x24fe   :  { %v1379_v3 = vrot.slane %v1378_v0, 4 }
0x2500   :  { %v1380_v1 = vadd.f32 %v1379_v3, %v1378_v0 }
0x2502   :  { %v1381_v4 = vrot.slane %v1380_v1, 2 }
0x2504   :  { %v1382_v49 = vadd.f32 %v1381_v4, %v1380_v1 }
0x2506   :  { %v1383_v5 = vrot.slane %v1382_v49, 1 }
0x2508   :  { %v1384_v38 = vadd.f32 %v1383_v5, %v1382_v49 }
0x250a   :  { %1692 = vrcp.f32 %v1384_v38 }
0x2510   :  { %v1693_v6 = vpop.eup %1692 }
0x2511   :  { %v1386_v25 = vmul.f32 %v1693_v6, %v1689_v2  ;;  %v1387_v8 = vmul.f32 %v1693_v6, %v1691_v63 }
0x2513   :  { %v1388_v32 = vmul.f32 %v1386_v25, %v1320_v35  ;;  %v1389_v11 = vmul.f32 %v1387_v8, %v1321_v45 }
0x2515   :  { %v1390_v13 = vsel %vm65_vm1, %v1388_v32, 0.0  ;;  %v1391_v16 = vsel %vm65_vm1, %v1389_v11, 0.0 }
0x2516   :  { %v1392_v17 = vadd.f32 %v1391_v16, %v1390_v13 }
0x2518   :  { %v1393_v43 = vrot.slane %v1392_v17, 4 }
0x251a   :  { %v1394_v18 = vadd.f32 %v1393_v43, %v1392_v17 }
0x251c   :  { %v1395_v37 = vrot.slane %v1394_v18, 2 }
0x251e   :  { %v1396_v23 = vadd.f32 %v1395_v37, %v1394_v18 }
0x2520   :  { %v1397_v19 = vrot.slane %v1396_v23, 1 }
0x2522   :  { %v1398_v20 = vadd.f32 %v1397_v19, %v1396_v23 }
0x2524   :  { %v1399_v22 = vpack.c.bf16 %v1398_v20, %v1398_v20 }
0x2526   :  { %1571 = vmatmul.msk.bf16.vlgmr.msrb.gmra.mxu1 %vm65_vm1, %v1399_v22 }
0x25a3   :  { %v1432_v60 = vpop.f32.mrf.mxu1 }
0x25a4   :  { %v1433_v7 = vadd.f32 %v1432_v60, %v1418_v12 }
0x25a6   :  { %v1436_v10 = vadd.f32 %v1433_v7, %v32_v21 }
0x25a8   :  { %v1438_v61 = vsel %vm1437_vm15, %v1436_v10, -inf }
0x25a9   :  { %1439 = vmax.xlane.f32.xlu0 %v1438_v61 }
0x25ab   :  { %v1434_v24 = vpop.f32.mrf.mxu1 }
0x261c   :  { %v1440_v26 = vpop.xlane.xlu0 %1439 }
0x261d   :  { %v1441_v27 = vsub.f32 %v1436_v10, %v1440_v26 }
0x261f   :  { %v1442_v28 = vmul.f32 1.442695, %v1441_v27 }
0x2621   :  { %1694 = vpow2.f32 %v1442_v28 }
0x2627   :  { %v1695_v52 = vpop.eup %1694 }
0x2628   :  { %v1444_v40 = vsel %vm1437_vm15, %v1695_v52, 0.0 }
0x2629   :  { %1445 = vadd.xlane.f32.xlu2 %v1444_v40 }
0x269c   :  { %v1446_v29 = vpop.xlane.xlu2 %1445 }
0x269d   :  { %1696 = vrcp.f32 %v1446_v29  ;;  %v1458_v35 = vand.u32 2147483648, %v1446_v29  ;;  %v1456_v14 = vand.u32 2147483647, %v1446_v29  ;;  %vm1452_vm0 = vweird.f32 %v1446_v29 }
0x269f   :  { %v1459_v42 = vor.u32 1.1754944e-38, %v1458_v35  ;;  %vm1457_vm3 = vcmp.eq.f32.partialorder %v1456_v14, 8.507059e+37 }
0x26a3   :  { %v1697_v30 = vpop.eup %1696 }
0x26a4   :  { %v1448_v33 = vmul.f32 %v1697_v30, %v1446_v29  ;;  %vm1453_vm1 = vweird.f32 %v1697_v30 }
0x26a5   :  { %vm1454_vm2 = vmor %vm1452_vm0, %vm1453_vm1 }
0x26a6   :  { %v1449_v34 = vsub.f32 1.0, %v1448_v33 }
0x26a8   :  { %v1450_v41 = vmul.f32 %v1697_v30, %v1449_v34 }
0x26aa   :  { %v1451_v36 = vadd.f32 %v1697_v30, %v1450_v41 }
0x26ac   :  { %v1455_v44 = vsel %vm1454_vm2, %v1697_v30, %v1451_v36 }
0x26ad   :  { %v1460_v45 = vsel %vm1457_vm3, %v1459_v42, %v1455_v44 }
0x26ae   :  { %v1461_v59 = vmul.f32 %v1695_v52, %v1460_v45 }
0x26b0   :  { %1462 = vst.msk [vmem:[#allocation3] sm:$0x1] %vm1437_vm15, %v1461_v59 }
0x26b1   :  { %1473 = dma.vmem_to_hbm [thread:$0]  %s1469_s16, 16, %s1471_s19, [#allocation4]  }
0x26b2   :  { %1723 = dma.done.wait [#allocation4], 16  }
0x26b3   :  { %1724 = vsyncadd [#allocation4], 4294967280 }
0x26b4   :  { %1478 = vsyncpa [#allocation4], 1 }

</bundles_post_ra>
